<compile_context>
chip_gen: v7x
topology: tpu7x:2x2x1
jax: 0.10.0
libtpu: 0.0.40
codegen_flags: <defaults>
</compile_context>

<pallas_src>
import math

import jax
import jax.numpy as jnp
from jax.experimental import pallas as pl
from jax.experimental.pallas import tpu as pltpu


_GELU_C = math.sqrt(2.0 / math.pi)


def _gelu_tanh(x):
    # 0.5 * x * (1 + tanh(sqrt(2/pi) * (x + 0.044715 x^3))) -- tanh hits the EUP slot.
    return 0.5 * x * (1.0 + jnp.tanh(_GELU_C * (x + 0.044715 * x * x * x)))


# --------------------------------------------------------------------------- #
# Kernels
# --------------------------------------------------------------------------- #


def _ffn_resident_kernel(x_ref, w1_ref, b1_ref, w2_ref, b2_ref, o_ref):
    """Weights-resident path: w1/w2 live in VMEM for the whole grid.

    x_ref : (tm, D) f32   w1_ref: (D, H) bf16   b1_ref: (1, H) f32
    w2_ref: (H, D) bf16   b2_ref: (1, D) f32    o_ref : (tm, D)
    """
    x = x_ref[...].astype(jnp.bfloat16)                       # cast once per row tile
    h = jnp.dot(x, w1_ref[...], preferred_element_type=jnp.float32)
    h = _gelu_tanh(h + b1_ref[...])                           # f32 activation (VPU/EUP)
    y = jnp.dot(h.astype(jnp.bfloat16), w2_ref[...],
                preferred_element_type=jnp.float32)
    o_ref[...] = (y + b2_ref[...]).astype(o_ref.dtype)


def _ffn_tiled_kernel(x_ref, w1_ref, b1_ref, w2_ref, b2_ref, o_ref,
                      acc_ref, xb_ref):
    """Fallback: hidden dim H streamed as a reduction axis (grid axis 1).

    acc_ref: (tm, D) f32 accumulator   xb_ref: (tm, D) bf16 x copy
    """
    j = pl.program_id(1)

    @pl.when(j == 0)
    def _():
        acc_ref[...] = jnp.zeros_like(acc_ref)
        xb_ref[...] = x_ref[...].astype(jnp.bfloat16)          # cast x once per row tile

    h = jnp.dot(xb_ref[...], w1_ref[...], preferred_element_type=jnp.float32)
    h = _gelu_tanh(h + b1_ref[...])
    acc_ref[...] += jnp.dot(h.astype(jnp.bfloat16), w2_ref[...],
                            preferred_element_type=jnp.float32)

    @pl.when(j == pl.num_programs(1) - 1)
    def _():
        o_ref[...] = (acc_ref[...] + b2_ref[...]).astype(o_ref.dtype)


# --------------------------------------------------------------------------- #
# Wrapper
# --------------------------------------------------------------------------- #


def _vmem_budget_bytes():
    """Generation-aware VMEM target: ~75% of the chip's physical VMEM."""
    try:
        cap = int(pltpu.get_tpu_info().vmem_capacity_bytes)
    except Exception:                                          # pragma: no cover
        cap = 64 * 2**20                                       # conservative (v7x)
    return int(0.75 * cap)


def _pick_tm(m):
    """Largest row tile dividing M that keeps >= 2 row tiles (both v7x TCs busy)."""
    candidates = (512, 256, 128)
    for tm in candidates:
        if m % tm == 0 and m // tm >= 2:
            return tm
    for tm in candidates:
        if m % tm == 0:
            return tm
    return m  # TODO(synk): rows not a multiple of 128 take one full-extent block


def _resident_footprint(tm, d, h):
    # double-buffered bf16 weights + f32 biases, double-buffered f32 x/out blocks
    weights = 2 * (d * h * 2 + h * d * 2 + h * 4 + d * 4)
    io = 2 * tm * d * 4 + 2 * tm * d * 4
    return weights + io


def _tiled_footprint(tm, th, d):
    weights = 2 * (d * th * 2 + th * d * 2 + th * 4 + d * 4)
    io = 2 * tm * d * 4 + 2 * tm * d * 4
    scratch = tm * d * 4 + tm * d * 2                          # f32 acc + bf16 x copy
    return weights + io + scratch


def prepare_params(params):
    """Cast weights to bf16 ONCE at parameter-load time (MXU input dtype)."""
    return {
        "w1": params["w1"].astype(jnp.bfloat16),               # (D, H)
        "b1": params["b1"].reshape(1, -1).astype(jnp.float32),  # (1, H)
        "w2": params["w2"].astype(jnp.bfloat16),               # (H, D)
        "b2": params["b2"].reshape(1, -1).astype(jnp.float32),  # (1, D)
    }


def feed_forward(x, params, *, block_m=None, block_h=None):
    """x: (..., D) float32.  params: prepare_params() output (bf16 weights)."""
    orig_shape = x.shape
    d = orig_shape[-1]
    m = math.prod(orig_shape[:-1])
    x2 = x.reshape(m, d)

    w1 = params["w1"]
    w2 = params["w2"]
    if w1.dtype != jnp.bfloat16:                               # tolerate raw f32 params
        w1 = w1.astype(jnp.bfloat16)
    if w2.dtype != jnp.bfloat16:
        w2 = w2.astype(jnp.bfloat16)
    b1 = params["b1"].reshape(1, -1).astype(jnp.float32)
    b2 = params["b2"].reshape(1, -1).astype(jnp.float32)
    h = w1.shape[1]

    tm = block_m or _pick_tm(m)
    assert m % tm == 0, "row tile must divide the flattened token count"
    budget = _vmem_budget_bytes()

    resident_fp = _resident_footprint(tm, d, h)
    use_resident = (block_h is None) and (resident_fp <= budget)

    if use_resident:
        # ---- weights-resident fast path: 1-D grid over row tiles only ------- #
        vmem_limit = int(min(budget, max(2 * resident_fp, 16 * 2**20)))
        out = pl.pallas_call(
            _ffn_resident_kernel,
            out_shape=jax.ShapeDtypeStruct((m, d), x.dtype),
            grid_spec=pltpu.PrefetchScalarGridSpec(
                num_scalar_prefetch=0,
                grid=(m // tm,),
                in_specs=[
                    pl.BlockSpec((tm, d), lambda i: (i, 0)),   # x rows (streamed)
                    pl.BlockSpec((d, h), lambda i: (0, 0)),    # w1 (resident)
                    pl.BlockSpec((1, h), lambda i: (0, 0)),    # b1 (resident)
                    pl.BlockSpec((h, d), lambda i: (0, 0)),    # w2 (resident)
                    pl.BlockSpec((1, d), lambda i: (0, 0)),    # b2 (resident)
                ],
                out_specs=pl.BlockSpec((tm, d), lambda i: (i, 0)),
            ),
            compiler_params=pltpu.CompilerParams(
                dimension_semantics=("parallel",),
                vmem_limit_bytes=vmem_limit,
            ),
        )(x2, w1, b1, w2, b2)
        return out.reshape(orig_shape)

    # ---- H-tiled fallback: hidden dim streamed as a reduction axis ---------- #
    th = block_h
    if th is None:
        th = 512 if h % 512 == 0 else (256 if h % 256 == 0 else h)
        # shrink the hidden tile until the per-step footprint fits the budget
        while th > 256 and _tiled_footprint(tm, th, d) > budget and h % (th // 2) == 0:
            th //= 2
    assert h % th == 0, "hidden tile must divide the hidden dim"

    fp = _tiled_footprint(tm, th, d)
    vmem_limit = int(min(budget, max(2 * fp, 16 * 2**20)))
    out = pl.pallas_call(
        _ffn_tiled_kernel,
        out_shape=jax.ShapeDtypeStruct((m, d), x.dtype),
        grid_spec=pltpu.PrefetchScalarGridSpec(
            num_scalar_prefetch=0,
            grid=(m // tm, h // th),
            in_specs=[
                pl.BlockSpec((tm, d), lambda i, j: (i, 0)),    # x rows
                pl.BlockSpec((d, th), lambda i, j: (0, j)),    # w1 hidden slice
                pl.BlockSpec((1, th), lambda i, j: (0, j)),    # b1 hidden slice
                pl.BlockSpec((th, d), lambda i, j: (j, 0)),    # w2 hidden slice
                pl.BlockSpec((1, d), lambda i, j: (0, 0)),     # b2
            ],
            out_specs=pl.BlockSpec((tm, d), lambda i, j: (i, 0)),
            scratch_shapes=[
                pltpu.VMEM((tm, d), jnp.float32),              # output accumulator
                pltpu.VMEM((tm, d), jnp.bfloat16),             # bf16 x copy
            ],
        ),
        compiler_params=pltpu.CompilerParams(
            dimension_semantics=("parallel", "arbitrary"),
            vmem_limit_bytes=vmem_limit,
        ),
    )(x2, w1, b1, w2, b2)
    return out.reshape(orig_shape)


# --------------------------------------------------------------------------- #
# Reference / params / demo
# --------------------------------------------------------------------------- #


def _reference(x, params):
    """Pure-JAX f32 reference mirroring the PyTorch forward (glu=False, dropout=0)."""
    h = _gelu_tanh(x @ params["w1"] + params["b1"])
    return h @ params["w2"] + params["b2"]


def init_params(key, *, dim, mult=4):
    """Deterministic synthetic parameters matching torch nn.Linear shapes/init.

    torch stores Linear weights as (out, in); we store the transpose (in, out).
    """
    hidden = dim * mult
    ks = jax.random.split(key, 4)

    def uni(k, shape, fan_in):
        std = 1.0 / math.sqrt(fan_in)
        return jax.random.uniform(k, shape, jnp.float32, -std, std)

    return {
        "w1": uni(ks[0], (dim, hidden), dim),
        "b1": uni(ks[1], (hidden,), dim),
        "w2": uni(ks[2], (hidden, dim), hidden),
        "b2": uni(ks[3], (dim,), hidden),
    }


if __name__ == "__main__":
    # Small, lane-dense demo shapes: batch=2, seq=128, dim=128, mult=4 -> hidden=512.
    # M = 256 -> two 128-row tiles on the "parallel" axis (both v7x TCs busy);
    # weights (bf16, ~0.25 MiB) trivially fit VMEM -> resident fast path.
    B, N, DIM, MULT = 2, 128, 128, 4

    key = jax.random.PRNGKey(0)
    kx, kp = jax.random.split(key)
    x = jax.random.normal(kx, (B, N, DIM), jnp.float32)
    params_f32 = init_params(kp, dim=DIM, mult=MULT)
    params = prepare_params(params_f32)                        # bf16 cast done once here

    out = feed_forward(x, params)
    out = jax.block_until_ready(out)

    ref = _reference(x, params_f32)
    assert out.shape == (B, N, DIM)
    # bf16 MXU inputs with f32 accumulation -> slightly looser tolerance vs f32 reference.
    assert jnp.allclose(out, ref, atol=3e-2, rtol=3e-2), "mismatch vs reference"

    print("KERNEL_OK")
</pallas_src>

<mosaic_0001>
module attributes {stable_mosaic.version = 11 : i64} {
  func.func @_ffn_resident_kernel(%arg0: i32, %arg1: memref<128x128xf32, #tpu.memory_space<vmem>>, %arg2: memref<128x512xbf16, #tpu.memory_space<vmem>>, %arg3: memref<1x512xf32, #tpu.memory_space<vmem>>, %arg4: memref<512x128xbf16, #tpu.memory_space<vmem>>, %arg5: memref<1x128xf32, #tpu.memory_space<vmem>>, %arg6: memref<128x128xf32, #tpu.memory_space<vmem>>) attributes {dimension_semantics = [#tpu.dimension_semantics<parallel>], iteration_bounds = array<i64: 2>, scalar_prefetch = 0 : i64, scratch_operands = 0 : i64, tpu.core_type = #tpu.core_type<tc>, window_params = [{transform_indices = @transform_0, window_bounds = array<i64: 128, 128>}, {pipeline_mode = #tpu.pipeline_mode<synchronous>, transform_indices = @transform_1, window_bounds = array<i64: 128, 512>}, {pipeline_mode = #tpu.pipeline_mode<synchronous>, transform_indices = @transform_2, window_bounds = array<i64: 1, 512>}, {pipeline_mode = #tpu.pipeline_mode<synchronous>, transform_indices = @transform_3, window_bounds = array<i64: 512, 128>}, {pipeline_mode = #tpu.pipeline_mode<synchronous>, transform_indices = @transform_4, window_bounds = array<i64: 1, 128>}, {transform_indices = @transform_5, window_bounds = array<i64: 128, 128>}]} {
    %c0 = arith.constant 0 : index
    %c0_0 = arith.constant 0 : index
    %0 = vector.load %arg1[%c0, %c0_0] : memref<128x128xf32, #tpu.memory_space<vmem>>, vector<128x128xf32>
    %1 = arith.truncf %0 : vector<128x128xf32> to vector<128x128xbf16>
    %c0_1 = arith.constant 0 : index
    %c0_2 = arith.constant 0 : index
    %2 = vector.load %arg2[%c0_1, %c0_2] : memref<128x512xbf16, #tpu.memory_space<vmem>>, vector<128x512xbf16>
    %cst = arith.constant dense<0.000000e+00> : vector<128x512xf32>
    %3 = tpu.matmul %1, %2, %cst {dimension_numbers = #tpu.dot_dimension_numbers<[1], [0], [0], [1], [0, 0, 1, 1], [], []>} : vector<128x128xbf16>, vector<128x512xbf16>, vector<128x512xf32> -> vector<128x512xf32>
    %c0_3 = arith.constant 0 : index
    %c0_4 = arith.constant 0 : index
    %4 = vector.load %arg3[%c0_3, %c0_4] : memref<1x512xf32, #tpu.memory_space<vmem>>, vector<1x512xf32>
    %5 = vector.broadcast %4 : vector<1x512xf32> to vector<128x512xf32>
    %6 = arith.addf %3, %5 : vector<128x512xf32>
    %cst_5 = arith.constant 5.000000e-01 : f32
    %7 = vector.broadcast %cst_5 : f32 to vector<128x512xf32>
    %8 = arith.mulf %7, %6 : vector<128x512xf32>
    %cst_6 = arith.constant 4.471500e-02 : f32
    %9 = vector.broadcast %cst_6 : f32 to vector<128x512xf32>
    %10 = arith.mulf %9, %6 : vector<128x512xf32>
    %11 = arith.mulf %10, %6 : vector<128x512xf32>
    %12 = arith.mulf %11, %6 : vector<128x512xf32>
    %13 = arith.addf %6, %12 : vector<128x512xf32>
    %cst_7 = arith.constant 0.797884583 : f32
    %14 = vector.broadcast %cst_7 : f32 to vector<128x512xf32>
    %15 = arith.mulf %14, %13 : vector<128x512xf32>
    %16 = math.tanh %15 : vector<128x512xf32>
    %cst_8 = arith.constant 1.000000e+00 : f32
    %17 = vector.broadcast %cst_8 : f32 to vector<128x512xf32>
    %18 = arith.addf %17, %16 : vector<128x512xf32>
    %19 = arith.mulf %8, %18 : vector<128x512xf32>
    %20 = arith.truncf %19 : vector<128x512xf32> to vector<128x512xbf16>
    %c0_9 = arith.constant 0 : index
    %c0_10 = arith.constant 0 : index
    %21 = vector.load %arg4[%c0_9, %c0_10] : memref<512x128xbf16, #tpu.memory_space<vmem>>, vector<512x128xbf16>
    %cst_11 = arith.constant dense<0.000000e+00> : vector<128x128xf32>
    %22 = tpu.matmul %20, %21, %cst_11 {dimension_numbers = #tpu.dot_dimension_numbers<[1], [0], [0], [1], [0, 0, 1, 1], [], []>} : vector<128x512xbf16>, vector<512x128xbf16>, vector<128x128xf32> -> vector<128x128xf32>
    %c0_12 = arith.constant 0 : index
    %c0_13 = arith.constant 0 : index
    %23 = vector.load %arg5[%c0_12, %c0_13] : memref<1x128xf32, #tpu.memory_space<vmem>>, vector<1x128xf32>
    %24 = vector.broadcast %23 : vector<1x128xf32> to vector<128x128xf32>
    %25 = arith.addf %22, %24 : vector<128x128xf32>
    %c0_14 = arith.constant 0 : index
    %c0_15 = arith.constant 0 : index
    %26 = vector.load %arg6[%c0_14, %c0_15] : memref<128x128xf32, #tpu.memory_space<vmem>>, vector<128x128xf32>
    tpu.vector_store %arg6[%c0_14, %c0_15], %25 {strides = array<i32>} : memref<128x128xf32, #tpu.memory_space<vmem>>, vector<128x128xf32>,
    return
  }
  func.func @transform_0(%arg0: i32) -> (i32, i32) {
    %c0_i32 = arith.constant 0 : i32
    %c0_i32_0 = arith.constant 0 : i32
    return %arg0, %c0_i32 : i32, i32
  }
  func.func @transform_1(%arg0: i32) -> (i32, i32) {
    %c0_i32 = arith.constant 0 : i32
    %c0_i32_0 = arith.constant 0 : i32
    %c0_i32_1 = arith.constant 0 : i32
    return %c0_i32, %c0_i32_0 : i32, i32
  }
  func.func @transform_2(%arg0: i32) -> (i32, i32) {
    %c0_i32 = arith.constant 0 : i32
    %c0_i32_0 = arith.constant 0 : i32
    %c0_i32_1 = arith.constant 0 : i32
    return %c0_i32, %c0_i32_0 : i32, i32
  }
  func.func @transform_3(%arg0: i32) -> (i32, i32) {
    %c0_i32 = arith.constant 0 : i32
    %c0_i32_0 = arith.constant 0 : i32
    %c0_i32_1 = arith.constant 0 : i32
    return %c0_i32, %c0_i32_0 : i32, i32
  }
  func.func @transform_4(%arg0: i32) -> (i32, i32) {
    %c0_i32 = arith.constant 0 : i32
    %c0_i32_0 = arith.constant 0 : i32
    %c0_i32_1 = arith.constant 0 : i32
    return %c0_i32, %c0_i32_0 : i32, i32
  }
  func.func @transform_5(%arg0: i32) -> (i32, i32) {
    %c0_i32 = arith.constant 0 : i32
    %c0_i32_0 = arith.constant 0 : i32
    return %arg0, %c0_i32 : i32, i32
  }
}

</mosaic_0001>

<bundles_post_ra>
// kernel: tpu_custom_call.1
= control target key start
LH: loop header
LB: loop body
LE: loop exit
PB: predicated region body
PF: predicated region fallthrough
CT: control target
= control target key end

     0   :  { %10 = vsyncpa [#allocation3], 0  ;;  %s3737_s0 = inlined_call_operand.hbm [shape: f32[256,128], index: 0, kind: input, shape index: {}]   ;;  %s3738_s1 = inlined_call_operand.hbm [shape: bf16[128,512], index: 1, kind: input, shape index: {}]   ;;  %s3739_s2 = inlined_call_operand.vmem [shape: f32[1,512], index: 2, kind: input, shape index: {}]   ;;  %s3740_s3 = inlined_call_operand.hbm [shape: bf16[512,128], index: 3, kind: input, shape index: {}]   ;;  %s3741_s4 = inlined_call_operand.vmem [shape: f32[1,128], index: 4, kind: input, shape index: {}]   ;;  %s3742_s5 = inlined_call_operand.hbm [shape: f32[256,128], index: 5, kind: output, shape index: {}]  }
   0x1   :  { %12 = vsyncpa [#allocation3 + $0x1], 0 }
   0x2   :  { %13 = vsyncpa [#allocation6], 0 }
   0x3   :  { %14 = vsyncpa [#allocation4], 0 }
   0x4   :  { %16 = vsyncpa [#allocation4 + $0x1], 0  ;;  %s2624_s18 = smov 0   ;;  %s2626_s19 = smov 0  }
   0x5   :  { %s2628_s20 = smov 0   ;;  %s2630_s21 = smov 0  }
   0x6 LB: > { %s2645_s22 = sadd.s32 4294967295, %s2579_s21   ;;  %s1926_s23 = sadd.s32 4294967294, %s2579_s21   ;;  %s2579_s21 = sphi %s2630_s21, %s3968_s21   ;;  %s2575_s20 = sphi %s2628_s20, %s3967_s20   ;;  %s2571_s19 = sphi %s2626_s19, %s3966_s19   ;;  %s2567_s18 = sphi %s2624_s18, %s3965_s18  }
   0x7   : > { %p42_p0 = scmp.ne.s32.totalorder %s2571_s19, %s2567_s18  ;;  %p3743_p1 = scmp.eq.s32.totalorder %s2645_s22, 0 }
   0x8   : > { %p156_p3 = scmp.eq.s32.totalorder %s1926_s23, 1  ;;  %p1927_p5 = scmp.ge.s32.totalorder %s2579_s21, 1 }
   0x9   : > { %p2654_p4 = por %p3743_p1, %p42_p0  ;;  %p163_p7 = scmp.lt.s32.totalorder %s2579_s21, 3 }
   0xa   : > { %p2659_p6 = por %p156_p3, %p42_p0  ;;  %s2581_s27 = smov [#allocation5]  }
   0xb   : > { %s3808_s24 = scalar_select %p2654_p4, 1, 0 }
   0xc   : > { %s3809_s25 = scalar_select %p2659_p6, 1, 0 }
   0xd   : > { %p2664_p8 = pnand %p1927_p5, %p163_p7  ;;  %s175_s28 = sshll.u32 %s2581_s27, 4  ;;  %s2668_s28 = int_to_ptr.vmem [resolvable:$true] %s175_s28 }
   0xe   : > { %s2582_s30 = smov [#allocation7]   ;;  %s2423_s9 = scalar_lea.hbm %s3738_s1, 4096 }
   0xf   : > { %p2151_p9 = pneg %p2664_p8  ;;  %s191_s6 = sshll.u32 %s2582_s30, 4  ;;  %s2679_s6 = int_to_ptr.vmem [resolvable:$true] %s191_s6 }
  0x10   : > { %p2424_p12 = scmp.ne.s32.totalorder %s3738_s1, %s2423_s9  ;;  %p2430_p5 = scmp.lt.u32.totalorder %s2423_s9, %s3738_s1 }
  0x11   : > { %p2675_p11 = pnand %p2151_p9, %p3743_p1 }
  0x13   : > { %p2425_p13 = pneg %p2675_p11 }
  0x15   : > { %p2426_p0 = pnand %p2425_p13, %p2424_p12 }
  0x17   : > { %p2427_p3 = pneg %p2426_p0 }
  0x19   : > { %p2432_p7 = pnand %p2430_p5, %p2427_p3 }
  0x1b   : > { %2435 = shalt.err (!%p2432_p7)
}
  0x1c   : > { %s2436_s14 = scalar_lea.vmem %s2668_s28, 4096  ;;  %p2444_p2 = scmp.lt.s32.totalorder %s2668_s28, %s2668_s28 }
  0x1d   : > { %p2437_p9 = scmp.ne.s32.totalorder %s2668_s28, %s2436_s14  ;;  %p2445_p12 = scmp.lt.s32.totalorder %s2436_s14, %s2436_s14 }
  0x1f   : > { %p2439_p10 = pnand %p2437_p9, %p2425_p13  ;;  %p2446_p0 = por %p2445_p12, %p2444_p2 }
  0x21   : > { %p2440_p1 = pneg %p2439_p10 }
  0x23   : > { %p2447_p6 = pnand %p2446_p0, %p2440_p1 }
  0x25   : > { %2450 = shalt.err (!%p2447_p6)
}
  0x26   : > { %s2583_s15 = smov 256   ;;  %s2584_s16 = smov 16  }
  0x27   : > { %2154 = dma.hbm_to_vmem [thread:$0]  (!%p2675_p11), %s3738_s1, 4096, %s2668_s28, [#allocation6], %s2583_s15, %s2583_s15, %s2584_s16  }
  0x28   : > { %s2451_s7 = scalar_lea.hbm %s3740_s3, 4096 }
  0x29   : > { %p2452_p2 = scmp.ne.s32.totalorder %s3740_s3, %s2451_s7  ;;  %p2458_p10 = scmp.lt.u32.totalorder %s2451_s7, %s3740_s3 }
  0x2b   : > { %p2454_p1 = pnand %p2452_p2, %p2425_p13 }
  0x2d   : > { %p2455_p6 = pneg %p2454_p1 }
  0x2f   : > { %p2460_p3 = pnand %p2458_p10, %p2455_p6 }
  0x31   : > { %2463 = shalt.err (!%p2460_p3)
}
  0x32   : > { %s2464_s28 = scalar_lea.vmem %s2679_s6, 4096  ;;  %p2472_p12 = scmp.lt.s32.totalorder %s2679_s6, %s2679_s6 }
  0x33   : > { %p2465_p5 = scmp.ne.s32.totalorder %s2679_s6, %s2464_s28  ;;  %p2473_p0 = scmp.lt.s32.totalorder %s2464_s28, %s2464_s28 }
  0x35   : > { %p2467_p7 = pnand %p2465_p5, %p2425_p13  ;;  %p2474_p2 = por %p2473_p0, %p2472_p12 }
  0x37   : > { %p2468_p9 = pneg %p2467_p7 }
  0x39   : > { %p2475_p1 = pnand %p2474_p2, %p2468_p9 }
  0x3b   : > { %2478 = shalt.err (!%p2475_p1)
}
  0x3c   : > { %s2585_s12 = smov 64   ;;  %s2586_s13 = smov 4  }
  0x3d   : > { %2157 = dma.hbm_to_vmem [thread:$0]  (!%p2675_p11), %s3740_s3, 4096, %s2679_s6, [#allocation6], %s2585_s12, %s2585_s12, %s2586_s13  }
  0x3e   : > { %s2734_s16 = sadd.s32 1, %s2579_s21   ;;  %s29_s23 = sadd.s32 1, %s2575_s20 }
  0x3f   : > { %s26_s17 = ssub.s32 %s2579_s21, %s2734_s16  ;;  %p36_p6 = scmp.ne.s32.totalorder %s2575_s20, %s2571_s19 }
  0x40   : > { %p27_p13 = scmp.eq.s32.totalorder %s26_s17, 0  ;;  %p37_p10 = scmp.eq.s32.totalorder %s2579_s21, 0 }
  0x41   : > { %p3812_p5 = scmp.eq.s32.totalorder %s2645_s22, 1  ;;  %p2168_p9 = scmp.lt.s32.totalorder %s2579_s21, 2 }
  0x42   : > { %s2743_s27 = scalar_select %p27_p13, %s2575_s20, %s29_s23  }
  0x43   : > { %p38_p3 = por %p37_p10, %p36_p6  ;;  %p2747_p7 = por %p3812_p5, %p36_p6 }
  0x44   : > { %s208_s29 = sand.u32 1, %s2575_s20   ;;  %s2009_s6 = sshll.u32 %s2579_s21, 11 }
  0x45   : > { %s3813_s30 = scalar_select %p2747_p7, 1, 0 }
  0x46   : > { %s1931_s7 = sshll.u32 %s208_s29, 7  ;;  %s2757_s10 = scalar_lea.hbm %s3737_s0, %s2009_s6 }
  0x47   : > { %s212_s11 = scalar_lea.vmem [#allocation2], %s1931_s7  ;;  %p2761_p11 = pnand %p2168_p9, %p38_p3 }
  0x48   : > { %s219_s28 = sshll.u32 %s212_s11, 4  ;;  %s2765_s13 = scalar_lea.sflag [#allocation3], %s208_s29  ;;  %s2759_s28 = int_to_ptr.vmem [resolvable:$true] %s219_s28 }
  0x49   : > { %s2479_s14 = scalar_lea.hbm %s2757_s10, 2048  ;;  %p2481_p0 = pneg %p2761_p11 }
  0x4a   : > { %p2480_p12 = scmp.ne.s32.totalorder %s2757_s10, %s2479_s14  ;;  %s2484_s23 = scalar_lea.hbm %s3737_s0, 4096 }
  0x4b   : > { %p2485_p13 = scmp.lt.u32.totalorder %s2757_s10, %s3737_s0  ;;  %p2486_p6 = scmp.lt.u32.totalorder %s2484_s23, %s2479_s14 }
  0x4c   : > { %p2482_p2 = pnand %p2481_p0, %p2480_p12  ;;  %p2488_p3 = scmp.lt.u32.totalorder %s2479_s14, %s2757_s10 }
  0x4d   : > { %p2487_p10 = por %p2486_p6, %p2485_p13 }
  0x4e   : > { %p2483_p1 = pneg %p2482_p2 }
  0x4f   : > { %p2489_p5 = por %p2488_p3, %p2487_p10 }
  0x51   : > { %p2490_p9 = pnand %p2489_p5, %p2483_p1 }
  0x53   : > { %2493 = shalt.err (!%p2490_p9)
}
  0x54   : > { %s2494_s29 = scalar_lea.vmem %s2759_s28, 2048  ;;  %s2587_s8 = smov [#allocation2]  }
  0x55   : > { %p2495_p12 = scmp.ne.s32.totalorder %s2759_s28, %s2494_s29  ;;  %s2499_s9 = sshll.u32 %s2587_s8, 4  ;;  %s2500_s9 = int_to_ptr.vmem [resolvable:$false] %s2499_s9 }
  0x56   : > { %s2501_s11 = scalar_lea.vmem %s2500_s9, 4096  ;;  %p2502_p4 = scmp.lt.s32.totalorder %s2759_s28, %s2500_s9 }
  0x57   : > { %p2497_p2 = pnand %p2495_p12, %p2481_p0  ;;  %p2503_p13 = scmp.lt.s32.totalorder %s2501_s11, %s2494_s29 }
  0x59   : > { %p2498_p7 = pneg %p2497_p2  ;;  %p2504_p6 = por %p2503_p13, %p2502_p4 }
  0x5b   : > { %p2505_p10 = pnand %p2504_p6, %p2498_p7 }
  0x5d   : > { %2508 = shalt.err (!%p2505_p10)
}
  0x5e   : > { %s2588_s14 = smov 128   ;;  %s2589_s15 = smov 8  }
  0x5f   : > { %2161 = dma.hbm_to_vmem [thread:$0]  (!%p2761_p11), %s2757_s10, 2048, %s2759_s28, %s2765_s13, %s2588_s14, %s2588_s14, %s2589_s15  }
  0x60   : > { %231 = sbr.rel (%p2664_p8) target bundleno = 770 (0x302), region = 40 }
  0x67   : > { %s2796_s17 = sand.u32 1, %s2571_s19   ;;  %p3815_p4 = scmp.ne.s32.totalorder %s3808_s24, 0 }
  0x68   : > { %s1935_s23 = sshll.u32 %s2796_s17, 7  ;;  %s234_s7 = scalar_lea.sflag [#allocation3], %s2796_s17 }
  0x69   : > { %s2802_s6 = scalar_lea.vmem [#allocation2], %s1935_s23 }
  0x6a   : > { %2554 = dma.done.wait (%p3815_p4), %s234_s7, 2048  }
  0x6b   : > { %2556 = vsyncadd (%p3815_p4), %s234_s7, 4294965248  ;;  %p3816_p7 = scmp.eq.s32.totalorder %s2645_s22, 0 }
  0x6d   : > { %2558 = dma.done.wait (%p3816_p7), [#allocation6], 8192   ;;  %p3817_p8 = pmov %p3816_p7 }
  0x6e   : > { %v2590_v0 = vmov 0   ;;  %v2215_v1 = vld [vmem:[#allocation5 + $0x4] ss:$16 sps:$4 sm:$0xff]   ;;  %v2217_v2 = vld [vmem:[#allocation5 + $0xc] ss:$16 sps:$4 sm:$0xff]   ;;  %s3654_s12 = scalar_lea.vmem [#allocation8], %s1935_s23 }
  0x6f   : > { %2560 = vsyncadd (%p3817_p8), [#allocation6], 4294959104  ;;  %545 = vmatprep.mubr.bf16.mxu0 %v2590_v0  ;;  %658 = vmatprep.mubr.bf16.mxu1 %v2590_v0  ;;  %v2219_v3 = vld [vmem:[#allocation5] ss:$16 sps:$4 sm:$0xff]   ;;  %v2220_v4 = vld [vmem:[#allocation5 + $0x8] ss:$16 sps:$4 sm:$0xff]  }
  0x70   : > { %513 = vmatprep.subr.bf16.mxu0 %v2215_v1  ;;  %626 = vmatprep.subr.bf16.mxu1 %v2217_v2  ;;  %v2221_v5 = vld [vmem:[#allocation5 + $0x24] ss:$16 sps:$4 sm:$0xff]   ;;  %v2223_v6 = vld [vmem:[#allocation5 + $0x2c] ss:$16 sps:$4 sm:$0xff]   ;;  %v2225_v7 = vld [vmem:[#allocation5 + $0x20] ss:$16 sps:$4 sm:$0xff]  }
  0x71   : > { %514 = vmatpush1.bf16.msra.mxu0 %v2219_v3  ;;  %627 = vmatpush1.bf16.msra.mxu1 %v2220_v4  ;;  %v2226_v8 = vld [vmem:[#allocation5 + $0x28] ss:$16 sps:$4 sm:$0xff]   ;;  %v2227_v9 = vld [vmem:[#allocation5 + $0x44] ss:$16 sps:$4 sm:$0xff]   ;;  %v2229_v10 = vld [vmem:[#allocation5 + $0x4c] ss:$16 sps:$4 sm:$0xff]  }
  0x72   : > { %515 = vmatprep.subr.bf16.mxu0 %v2221_v5  ;;  %628 = vmatprep.subr.bf16.mxu1 %v2223_v6  ;;  %v2231_v11 = vld [vmem:[#allocation5 + $0x40] ss:$16 sps:$4 sm:$0xff]   ;;  %v2232_v12 = vld [vmem:[#allocation5 + $0x48] ss:$16 sps:$4 sm:$0xff]   ;;  %v2233_v13 = vld [vmem:[#allocation5 + $0x64] ss:$16 sps:$4 sm:$0xff]  }
  0x73   : > { %v2235_v14 = vld [vmem:[#allocation5 + $0x6c] ss:$16 sps:$4 sm:$0xff]   ;;  %v2237_v15 = vld [vmem:[#allocation5 + $0x60] ss:$16 sps:$4 sm:$0xff]   ;;  %v2238_v16 = vld [vmem:[#allocation5 + $0x68] ss:$16 sps:$4 sm:$0xff]  }
  0x74   : > { %v2239_v17 = vld [vmem:[#allocation5 + $0x84] ss:$16 sps:$4 sm:$0xff]   ;;  %v2241_v18 = vld [vmem:[#allocation5 + $0x8c] ss:$16 sps:$4 sm:$0xff]   ;;  %v2243_v19 = vld [vmem:[#allocation5 + $0x80] ss:$16 sps:$4 sm:$0xff]  }
  0x75   : > { %516 = vmatpush1.bf16.msra.mxu0 %v2225_v7  ;;  %629 = vmatpush1.bf16.msra.mxu1 %v2226_v8  ;;  %v2244_v20 = vld [vmem:[#allocation5 + $0x88] ss:$16 sps:$4 sm:$0xff]   ;;  %v2245_v21 = vld [vmem:[#allocation5 + $0xa4] ss:$16 sps:$4 sm:$0xff]   ;;  %v2247_v22 = vld [vmem:[#allocation5 + $0xac] ss:$16 sps:$4 sm:$0xff]  }
  0x76   : > { %517 = vmatprep.subr.bf16.mxu0 %v2227_v9  ;;  %630 = vmatprep.subr.bf16.mxu1 %v2229_v10  ;;  %v2249_v23 = vld [vmem:[#allocation5 + $0xa0] ss:$16 sps:$4 sm:$0xff]   ;;  %v2250_v24 = vld [vmem:[#allocation5 + $0xa8] ss:$16 sps:$4 sm:$0xff]   ;;  %v2251_v25 = vld [vmem:[#allocation5 + $0xc4] ss:$16 sps:$4 sm:$0xff]  }
  0x77   : > { %v2253_v26 = vld [vmem:[#allocation5 + $0xcc] ss:$16 sps:$4 sm:$0xff]   ;;  %v2255_v27 = vld [vmem:[#allocation5 + $0xc0] ss:$16 sps:$4 sm:$0xff]   ;;  %v2256_v28 = vld [vmem:[#allocation5 + $0xc8] ss:$16 sps:$4 sm:$0xff]  }
  0x78   : > { %v2257_v29 = vld [vmem:[#allocation5 + $0xe4] ss:$16 sps:$4 sm:$0xff]   ;;  %v2259_v30 = vld [vmem:[#allocation5 + $0xec] ss:$16 sps:$4 sm:$0xff]   ;;  %v2261_v31 = vld [vmem:[#allocation5 + $0xe0] ss:$16 sps:$4 sm:$0xff]  }
  0x79   : > { %518 = vmatpush1.bf16.msra.mxu0 %v2231_v11  ;;  %631 = vmatpush1.bf16.msra.mxu1 %v2232_v12  ;;  %v2262_v32 = vld [vmem:[#allocation5 + $0xe8] ss:$16 sps:$4 sm:$0xff]   ;;  %v275_v33 = vld [vmem:[%s2802_s6] sm:$0xff]  ;;  %v277_v41 = vld [vmem:[%s2802_s6 + $0x10] sm:$0xff]  ;;  %s2010_s13 = sshll.u32 %s2645_s22, 11  ;;  %s1834_s29 = sshll.u32 %s3654_s12, 4  ;;  %s3691_s29 = int_to_ptr.vmem [resolvable:$true] %s1834_s29 }
  0x7a   : > { %519 = vmatprep.subr.bf16.mxu0 %v2233_v13  ;;  %632 = vmatprep.subr.bf16.mxu1 %v2235_v14  ;;  %v276_v34 = vld [vmem:[%s2802_s6 + $0x8] sm:$0xff]  ;;  %v2263_v35 = vld [vmem:[#allocation7 + $0x40] sm:$0xff]   ;;  %v278_v42 = vld [vmem:[%s2802_s6 + $0x18] sm:$0xff]  ;;  %s3689_s11 = scalar_lea.hbm %s3742_s5, %s2010_s13  ;;  %s1821_s14 = scalar_lea.sflag [#allocation4], %s2796_s17 }
  0x7b   : > { %v2265_v36 = vld [vmem:[#allocation7 + $0xc0] sm:$0xff]   ;;  %v291_v37 = vpack.c.bf16 %v276_v34, %v275_v33  ;;  %v2267_v40 = vld [vmem:[#allocation7 + $0x48] sm:$0xff]   ;;  %v2271_v46 = vld [vmem:[#allocation7 + $0x50] sm:$0xff]   ;;  %v292_v48 = vpack.c.bf16 %v278_v42, %v277_v41  ;;  %s2509_s15 = scalar_lea.vmem %s3691_s29, 2048  ;;  %p3962_p0 = scmp.ne.s32.totalorder %s3813_s30, 0 }
  0x7c   : > { %v2264_v38 = vld [vmem:[#allocation7] sm:$0xff]   ;;  %v2269_v43 = vld [vmem:[#allocation7 + $0xc8] sm:$0xff]   ;;  %v2273_v47 = vld [vmem:[#allocation7 + $0xd0] sm:$0xff]   ;;  %p2510_p11 = scmp.ne.s32.totalorder %s3691_s29, %s2509_s15  ;;  %s2591_s22 = smov [#allocation8]  }
  0x7d   : > { %520 = vmatpush1.bf16.msra.mxu0 %v2237_v15  ;;  %633 = vmatpush1.bf16.msra.mxu1 %v2238_v16  ;;  %v2266_v39 = vld [vmem:[#allocation7 + $0x80] sm:$0xff]   ;;  %v2268_v44 = vld [vmem:[#allocation7 + $0x8] sm:$0xff]   ;;  %v2272_v49 = vld [vmem:[#allocation7 + $0x10] sm:$0xff]   ;;  %s2513_s23 = sshll.u32 %s2591_s22, 4  ;;  %s2514_s23 = int_to_ptr.vmem [resolvable:$false] %s2513_s23 }
  0x7e   : > { %521 = vmatprep.subr.bf16.mxu0 %v2239_v17  ;;  %634 = vmatprep.subr.bf16.mxu1 %v2241_v18  ;;  %v2270_v45 = vld [vmem:[#allocation7 + $0x88] sm:$0xff]   ;;  %v2274_v50 = vld [vmem:[#allocation7 + $0x90] sm:$0xff]   ;;  %v279_v51 = vld [vmem:[%s2802_s6 + $0x20] sm:$0xff]  ;;  %p2511_p1 = pnand %p2510_p11, %p3962_p0  ;;  %s2515_s7 = scalar_lea.vmem %s2514_s23, 4096 }
  0x7f   : > { %v280_v52 = vld [vmem:[%s2802_s6 + $0x28] sm:$0xff]  ;;  %v2275_v53 = vld [vmem:[#allocation7 + $0x58] sm:$0xff]   ;;  %v281_v58 = vld [vmem:[%s2802_s6 + $0x30] sm:$0xff]  ;;  %p2516_p5 = scmp.lt.s32.totalorder %s3691_s29, %s2514_s23  ;;  %p2517_p9 = scmp.lt.s32.totalorder %s2515_s7, %s2509_s15 }
  0x80   : > { %v2277_v54 = vld [vmem:[#allocation7 + $0xd8] sm:$0xff]   ;;  %v293_v57 = vpack.c.bf16 %v280_v52, %v279_v51  ;;  %v283_v61 = vld [vmem:[%s2802_s6 + $0x40] sm:$0xff]  ;;  %v284_v62 = vld [vmem:[%s2802_s6 + $0x48] sm:$0xff]  ;;  %p2512_p3 = pneg %p2511_p1 }
  0x81   : > { %522 = vmatpush1.bf16.msra.mxu0 %v2243_v19  ;;  %635 = vmatpush1.bf16.msra.mxu1 %v2244_v20  ;;  %v2276_v55 = vld [vmem:[#allocation7 + $0x18] sm:$0xff]   ;;  %v295_v63 = vpack.c.bf16 %v284_v62, %v283_v61  ;;  %v285_v1 = vld [vmem:[%s2802_s6 + $0x50] sm:$0xff]  ;;  %v287_v4 = vld [vmem:[%s2802_s6 + $0x60] sm:$0xff]  ;;  %p2518_p12 = por %p2517_p9, %p2516_p5 }
  0x82   : > { %523 = vmatprep.subr.bf16.mxu0 %v2245_v21  ;;  %636 = vmatprep.subr.bf16.mxu1 %v2247_v22  ;;  %v2278_v56 = vld [vmem:[#allocation7 + $0x98] sm:$0xff]   ;;  %v288_v5 = vld [vmem:[%s2802_s6 + $0x68] sm:$0xff]  ;;  %v289_v7 = vld [vmem:[%s2802_s6 + $0x70] sm:$0xff] }
  0x83   : > { %v282_v59 = vld [vmem:[%s2802_s6 + $0x38] sm:$0xff]  ;;  %v297_v6 = vpack.c.bf16 %v288_v5, %v287_v4  ;;  %v2279_v10 = vld [vmem:[#allocation7 + $0x60] sm:$0xff]   ;;  %v2283_v14 = vld [vmem:[#allocation7 + $0x68] sm:$0xff]   ;;  %p2519_p2 = pnand %p2518_p12, %p2512_p3 }
  0x84   : > { %v294_v60 = vpack.c.bf16 %v282_v59, %v281_v58  ;;  %v286_v2 = vld [vmem:[%s2802_s6 + $0x58] sm:$0xff]  ;;  %v2280_v11 = vld [vmem:[#allocation7 + $0x20] sm:$0xff]   ;;  %v2284_v15 = vld [vmem:[#allocation7 + $0x28] sm:$0xff]  }
  0x85   : > { %524 = vmatpush1.bf16.msra.mxu0 %v2249_v23  ;;  %637 = vmatpush1.bf16.msra.mxu1 %v2250_v24  ;;  %v296_v3 = vpack.c.bf16 %v286_v2, %v285_v1  ;;  %v290_v8 = vld [vmem:[%s2802_s6 + $0x78] sm:$0xff]  ;;  %v2281_v12 = vld [vmem:[#allocation7 + $0xe0] sm:$0xff]   ;;  %v2285_v16 = vld [vmem:[#allocation7 + $0xe8] sm:$0xff]  }
  0x86   : > { %525 = vmatprep.subr.bf16.mxu0 %v2251_v25  ;;  %638 = vmatprep.subr.bf16.mxu1 %v2253_v26  ;;  %v298_v9 = vpack.c.bf16 %v290_v8, %v289_v7  ;;  %v2282_v13 = vld [vmem:[#allocation7 + $0xa0] sm:$0xff]   ;;  %v2286_v17 = vld [vmem:[#allocation7 + $0xa8] sm:$0xff]   ;;  %v2288_v18 = vld [vmem:[#allocation7 + $0x30] sm:$0xff]   ;;  %v333_v25 = vlaneseq }
  0x87   : > { %v2289_v19 = vld [vmem:[#allocation7 + $0xf0] sm:$0xff]   ;;  %v2291_v21 = vld [vmem:[#allocation7 + $0x78] sm:$0xff]  }
  0x88   : > { %v2290_v20 = vld [vmem:[#allocation7 + $0xb0] sm:$0xff]   ;;  %v2293_v22 = vld [vmem:[#allocation7 + $0xf8] sm:$0xff]   ;;  %v334_v26 = vshrl.u32 %v333_v25, 7 }
  0x89   : > { %526 = vmatpush1.bf16.msra.mxu0 %v2255_v27  ;;  %639 = vmatpush1.bf16.msra.mxu1 %v2256_v28  ;;  %v2292_v23 = vld [vmem:[#allocation7 + $0x38] sm:$0xff]  }
  0x8a   : > { %527 = vmatprep.subr.bf16.mxu0 %v2257_v29  ;;  %640 = vmatprep.subr.bf16.mxu1 %v2259_v30  ;;  %v2294_v24 = vld [vmem:[#allocation7 + $0xb8] sm:$0xff]   ;;  %v335_v27 = vsub.s32 0, %v334_v26  ;;  %v343_v28 = vsub.s32 2, %v334_v26  ;;  %v331_v29 = vld [vmem:[%s3739_s2] sm:$0xf]  ;;  %v339_v30 = vsub.s32 1, %v334_v26 }
  0x8c   : > { %v2849_v33 = vrot.slane %v331_v29, %v343_v28  ;;  %v2851_v34 = vrot.slane %v331_v29, %v339_v30 }
  0x8d   : > { %528 = vmatpush1.bf16.msra.mxu0 %v2261_v31  ;;  %641 = vmatpush1.bf16.msra.mxu1 %v2262_v32  ;;  %v347_v31 = vsub.s32 3, %v334_v26  ;;  %v2847_v32 = vrot.slane %v331_v29, %v335_v27 }
  0x8e   : > { %2011 = vmatprep.subr.bf16.mxu0 %v2263_v35  ;;  %2075 = vmatprep.subr.bf16.mxu1 %v2265_v36 }
  0x8f   : > { %v2853_v35 = vrot.slane %v331_v29, %v347_v31 }
  0x90   : > { %546 = vmatmul.mubr.bf16.vlgmr.msra.gmra.mrb[0].mxu0 %v291_v37  ;;  %659 = vmatmul.mubr.bf16.vlgmr.msra.gmra.mrb[0].mxu1 %v291_v37 }
  0x91   : > { %555 = vmatprep.mubr.bf16.mxu0 %v2590_v0  ;;  %668 = vmatprep.mubr.bf16.mxu1 %v2590_v0 }
  0x92   : > { %2012 = vmatpush3.bf16.msra.mxu0 %v2264_v38  ;;  %2076 = vmatpush3.bf16.msra.mxu1 %v2266_v39 }
  0x93   : > { %2013 = vmatprep.subr.bf16.mxu0 %v2267_v40  ;;  %2077 = vmatprep.subr.bf16.mxu1 %v2269_v43 }
  0x96   : > { %2014 = vmatpush3.bf16.msra.mxu0 %v2268_v44  ;;  %2078 = vmatpush3.bf16.msra.mxu1 %v2270_v45 }
  0x97   : > { %2015 = vmatprep.subr.bf16.mxu0 %v2271_v46  ;;  %2079 = vmatprep.subr.bf16.mxu1 %v2273_v47 }
  0x98   : > { %556 = vmatmul.mubr.bf16.gmra.mrb[4].mxu0 %v292_v48  ;;  %669 = vmatmul.mubr.bf16.gmra.mrb[4].mxu1 %v292_v48 }
  0x99   : > { %565 = vmatprep.mubr.bf16.mxu0 %v2590_v0  ;;  %678 = vmatprep.mubr.bf16.mxu1 %v2590_v0 }
  0x9a   : > { %2016 = vmatpush3.bf16.msra.mxu0 %v2272_v49  ;;  %2080 = vmatpush3.bf16.msra.mxu1 %v2274_v50 }
  0x9b   : > { %2017 = vmatprep.subr.bf16.mxu0 %v2275_v53  ;;  %2081 = vmatprep.subr.bf16.mxu1 %v2277_v54 }
  0x9e   : > { %2018 = vmatpush3.bf16.msra.mxu0 %v2276_v55  ;;  %2082 = vmatpush3.bf16.msra.mxu1 %v2278_v56 }
  0x9f   : > { %2019 = vmatprep.subr.bf16.mxu0 %v2279_v10  ;;  %2083 = vmatprep.subr.bf16.mxu1 %v2281_v12 }
  0xa0   : > { %566 = vmatmul.mubr.bf16.gmra.mrb[8].mxu0 %v293_v57  ;;  %679 = vmatmul.mubr.bf16.gmra.mrb[8].mxu1 %v293_v57 }
  0xa1   : > { %575 = vmatprep.mubr.bf16.mxu0 %v2590_v0  ;;  %688 = vmatprep.mubr.bf16.mxu1 %v2590_v0 }
  0xa2   : > { %2020 = vmatpush3.bf16.msra.mxu0 %v2280_v11  ;;  %2084 = vmatpush3.bf16.msra.mxu1 %v2282_v13 }
  0xa3   : > { %2021 = vmatprep.subr.bf16.mxu0 %v2283_v14  ;;  %2085 = vmatprep.subr.bf16.mxu1 %v2285_v16 }
  0xa6   : > { %2022 = vmatpush3.bf16.msra.mxu0 %v2284_v15  ;;  %2086 = vmatpush3.bf16.msra.mxu1 %v2286_v17 }
  0xa7   : > { %2087 = vmatprep.subr.bf16.mxu1 %v2289_v19 }
  0xa8   : > { %576 = vmatmul.mubr.bf16.gmra.mrb[12].mxu0 %v294_v60  ;;  %689 = vmatmul.mubr.bf16.gmra.mrb[12].mxu1 %v294_v60 }
  0xa9   : > { %585 = vmatprep.mubr.bf16.mxu0 %v2590_v0  ;;  %698 = vmatprep.mubr.bf16.mxu1 %v2590_v0 }
  0xaa   : > { %2088 = vmatpush3.bf16.msra.mxu1 %v2290_v20 }
  0xab   : > { %2089 = vmatprep.subr.bf16.mxu1 %v2293_v22 }
  0xae   : > { %2090 = vmatpush3.bf16.msra.mxu1 %v2294_v24 }
  0xb0   : > { %586 = vmatmul.mubr.bf16.gmra.mrb[16].mxu0 %v295_v63  ;;  %699 = vmatmul.mubr.bf16.gmra.mrb[16].mxu1 %v295_v63 }
  0xb1   : > { %595 = vmatprep.mubr.bf16.mxu0 %v2590_v0  ;;  %708 = vmatprep.mubr.bf16.mxu1 %v2590_v0 }
  0xb8   : > { %596 = vmatmul.mubr.bf16.gmra.mrb[20].mxu0 %v296_v3  ;;  %709 = vmatmul.mubr.bf16.gmra.mrb[20].mxu1 %v296_v3 }
  0xb9   : > { %605 = vmatprep.mubr.bf16.mxu0 %v2590_v0  ;;  %718 = vmatprep.mubr.bf16.mxu1 %v2590_v0 }
  0xc0   : > { %606 = vmatmul.mubr.bf16.gmra.mrb[24].mxu0 %v297_v6  ;;  %719 = vmatmul.mubr.bf16.gmra.mrb[24].mxu1 %v297_v6 }
  0xc1   : > { %615 = vmatprep.mubr.bf16.mxu0 %v2590_v0  ;;  %728 = vmatprep.mubr.bf16.mxu1 %v2590_v0  ;;  %v2287_v0 = vld [vmem:[#allocation7 + $0x70] sm:$0xff]  }
  0xc2   : > { %2023 = vmatprep.subr.bf16.mxu0 %v2287_v0 }
  0xc3   : > { %2024 = vmatpush3.bf16.msra.mxu0 %v2288_v18 }
  0xc4   : > { %2025 = vmatprep.subr.bf16.mxu0 %v2291_v21 }
  0xc7   : > { %2026 = vmatpush3.bf16.msra.mxu0 %v2292_v23 }
  0xc8   : > { %616 = vmatmul.mubr.bf16.gmra.mrb[28].mxu0 %v298_v9  ;;  %729 = vmatmul.mubr.bf16.gmra.mrb[28].mxu1 %v298_v9 }
 0x163   : > { %v547_v36 = vpop.f32.mrb[0].mxu0  ;;  %v660_v37 = vpop.f32.mrb[0].mxu1 }
 0x164   : > { %v548_v38 = vadd.f32 %v547_v36, %v2847_v32  ;;  %v661_v39 = vadd.f32 %v660_v37, %v2849_v33  ;;  %v549_v40 = vpop.f32.mrb[1].mxu0  ;;  %v662_v41 = vpop.f32.mrb[1].mxu1 }
 0x165   : > { %v2858_v42 = vadd.f32 %v549_v40, %v2851_v34  ;;  %v2861_v43 = vadd.f32 %v662_v41, %v2853_v35  ;;  %v551_v44 = vpop.f32.mrb[2].mxu0  ;;  %v664_v45 = vpop.f32.mrb[2].mxu1 }
 0x166   : > { %v803_v46 = vmul.f32 0.044715, %v548_v38  ;;  %v805_v47 = vmul.f32 0.044715, %v661_v39  ;;  %v552_v48 = vadd.f32 %v551_v44, %v2847_v32  ;;  %v665_v49 = vadd.f32 %v664_v45, %v2849_v33  ;;  %v553_v50 = vpop.f32.mrb[3].mxu0  ;;  %v666_v51 = vpop.f32.mrb[3].mxu1 }
 0x167   : > { %v804_v54 = vmul.f32 0.044715, %v2858_v42  ;;  %v806_v55 = vmul.f32 0.044715, %v2861_v43  ;;  %v2868_v60 = vadd.f32 %v553_v50, %v2851_v34  ;;  %v2871_v62 = vadd.f32 %v666_v51, %v2853_v35 }
 0x168   : > { %v867_v52 = vmul.f32 %v803_v46, %v548_v38  ;;  %v869_v53 = vmul.f32 %v805_v47, %v661_v39  ;;  %v807_v56 = vmul.f32 0.044715, %v552_v48  ;;  %v809_v59 = vmul.f32 0.044715, %v665_v49 }
 0x169   : > { %v868_v3 = vmul.f32 %v804_v54, %v2858_v42  ;;  %v870_v7 = vmul.f32 %v806_v55, %v2861_v43  ;;  %v2881_v13 = vmul.f32 0.5, %v548_v38  ;;  %v808_v16 = vmul.f32 0.044715, %v2868_v60 }
 0x16a   : > { %v931_v57 = vmul.f32 %v867_v52, %v548_v38  ;;  %v933_v58 = vmul.f32 %v869_v53, %v661_v39  ;;  %v871_v61 = vmul.f32 %v807_v56, %v552_v48  ;;  %v873_v4 = vmul.f32 %v809_v59, %v665_v49 }
 0x16b   : > { %v557_v63 = vpop.f32.mrb[4].mxu0  ;;  %v670_v1 = vpop.f32.mrb[4].mxu1  ;;  %v2884_v19 = vmul.f32 0.5, %v661_v39  ;;  %v810_v21 = vmul.f32 0.044715, %v2871_v62  ;;  %v2893_v26 = vmul.f32 %v868_v3, %v2858_v42  ;;  %v2896_v27 = vmul.f32 %v870_v7, %v2861_v43 }
 0x16c   : > { %v995_v2 = vadd.f32 %v931_v57, %v548_v38  ;;  %v559_v5 = vpop.f32.mrb[5].mxu0  ;;  %v672_v6 = vpop.f32.mrb[5].mxu1  ;;  %v935_v8 = vmul.f32 %v871_v61, %v552_v48  ;;  %v2876_v9 = vadd.f32 %v557_v63, %v2847_v32  ;;  %v2879_v10 = vadd.f32 %v670_v1, %v2849_v33 }
 0x16d   : > { %v561_v11 = vpop.f32.mrb[6].mxu0  ;;  %v674_v12 = vpop.f32.mrb[6].mxu1  ;;  %v997_v14 = vadd.f32 %v933_v58, %v661_v39  ;;  %v937_v15 = vmul.f32 %v873_v4, %v665_v49  ;;  %v2890_v25 = vadd.f32 %v559_v5, %v2851_v34  ;;  %v2898_v28 = vmul.f32 0.5, %v552_v48 }
 0x16e   : > { %3818 = vst [vmem:[#allocation12_spill] sm:$0xff] %v2876_v9  ;;  %3819 = vst [vmem:[#allocation13_spill] sm:$0xff] %v2879_v10  ;;  %v563_v17 = vpop.f32.mrb[7].mxu0  ;;  %v676_v0 = vpop.f32.mrb[7].mxu1  ;;  %v1059_v18 = vmul.f32 0.7978846, %v995_v2  ;;  %v999_v20 = vadd.f32 %v935_v8, %v552_v48  ;;  %v872_v31 = vmul.f32 %v808_v16, %v2868_v60  ;;  %v2904_v36 = vadd.f32 %v672_v6, %v2853_v35 }
 0x16f   : > { %v1001_v22 = vadd.f32 %v937_v15, %v665_v49  ;;  %v811_v23 = vmul.f32 0.044715, %v2876_v9  ;;  %v813_v24 = vmul.f32 0.044715, %v2879_v10  ;;  %v2900_v29 = vmul.f32 0.5, %v665_v49 }
 0x170   : > { %v1061_v30 = vmul.f32 0.7978846, %v997_v14  ;;  %3820 = vst [vmem:[#allocation14_spill] sm:$0xff] %v2904_v36  ;;  %v2907_v37 = vadd.f32 %v561_v11, %v2847_v32  ;;  %v1063_v38 = vmul.f32 0.7978846, %v999_v20  ;;  %v874_v39 = vmul.f32 %v810_v21, %v2871_v62 }
 0x171   : > { %v812_v40 = vmul.f32 0.044715, %v2890_v25  ;;  %v2912_v41 = vadd.f32 %v674_v12, %v2849_v33  ;;  %2295 = vtanh.f32 %v1059_v18  ;;  %v1065_v46 = vmul.f32 0.7978846, %v1001_v22 }
 0x172   : > { %3821 = vst [vmem:[#allocation15_spill] sm:$0xff] %v2907_v37  ;;  %v875_v47 = vmul.f32 %v811_v23, %v2876_v9  ;;  %v877_v48 = vmul.f32 %v813_v24, %v2879_v10  ;;  %v814_v51 = vmul.f32 0.044715, %v2904_v36  ;;  %v2918_v52 = vadd.f32 %v563_v17, %v2851_v34 }
 0x173   : > { %3822 = vst [vmem:[#allocation16_spill] sm:$0xff] %v2912_v41  ;;  %v567_v44 = vpop.f32.mrb[8].mxu0  ;;  %v680_v45 = vpop.f32.mrb[8].mxu1  ;;  %v2921_v53 = vadd.f32 %v676_v0, %v2853_v35  ;;  %2297 = vtanh.f32 %v1061_v30  ;;  %v815_v57 = vmul.f32 0.044715, %v2907_v37  ;;  %v2932_v1 = vmul.f32 %v872_v31, %v2868_v60 }
 0x174   : > { %v569_v49 = vpop.f32.mrb[9].mxu0  ;;  %v682_v50 = vpop.f32.mrb[9].mxu1  ;;  %v2924_v54 = vadd.f32 %v567_v44, %v2847_v32  ;;  %v817_v58 = vmul.f32 0.044715, %v2912_v41  ;;  %v2929_v59 = vadd.f32 %v680_v45, %v2849_v33  ;;  %2299 = vtanh.f32 %v1063_v38 }
 0x175   : > { %3823 = vst [vmem:[#allocation17_spill] sm:$0xff] %v2921_v53  ;;  %v571_v55 = vpop.f32.mrb[10].mxu0  ;;  %v684_v56 = vpop.f32.mrb[10].mxu1  ;;  %v876_v2 = vmul.f32 %v812_v40, %v2890_v25  ;;  %v816_v3 = vmul.f32 0.044715, %v2918_v52  ;;  %v2940_v7 = vadd.f32 %v569_v49, %v2851_v34  ;;  %2301 = vtanh.f32 %v1065_v46 }
 0x176   : > { %3824 = vst [vmem:[#allocation18_spill] sm:$0xff] %v2924_v54  ;;  %3825 = vst [vmem:[#allocation19_spill] sm:$0xff] %v2929_v59  ;;  %v573_v61 = vpop.f32.mrb[11].mxu0  ;;  %v686_v63 = vpop.f32.mrb[11].mxu1  ;;  %v818_v4 = vmul.f32 0.044715, %v2921_v53  ;;  %v2943_v8 = vmul.f32 %v874_v39, %v2871_v62  ;;  %v2946_v11 = vmul.f32 %v875_v47, %v2876_v9  ;;  %v2949_v12 = vmul.f32 %v877_v48, %v2879_v10 }
 0x177   : > { %v819_v5 = vmul.f32 0.044715, %v2924_v54  ;;  %v821_v6 = vmul.f32 0.044715, %v2929_v59  ;;  %3826 = vst [vmem:[#allocation20_spill] sm:$0xff] %v2940_v7  ;;  %v878_v14 = vmul.f32 %v814_v51, %v2904_v36  ;;  %v879_v15 = vmul.f32 %v815_v57, %v2907_v37 }
 0x178   : > { %3827 = vst [vmem:[#allocation21_spill] sm:$0xff] %v2946_v11  ;;  %3828 = vst [vmem:[#allocation22_spill] sm:$0xff] %v2949_v12  ;;  %v881_v16 = vmul.f32 %v817_v58, %v2912_v41  ;;  %v820_v17 = vmul.f32 0.044715, %v2940_v7  ;;  %v880_v0 = vmul.f32 %v816_v3, %v2918_v52  ;;  %v2957_v18 = vadd.f32 %v682_v50, %v2853_v35 }
 0x179   : > { %v2960_v20 = vadd.f32 %v571_v55, %v2847_v32  ;;  %v2963_v21 = vadd.f32 %v684_v56, %v2849_v33  ;;  %v2966_v24 = vmul.f32 %v876_v2, %v2890_v25  ;;  %v882_v30 = vmul.f32 %v818_v4, %v2921_v53 }
 0x17a   : > { %3829 = vst [vmem:[#allocation23_spill] sm:$0xff] %v2957_v18  ;;  %v883_v31 = vmul.f32 %v819_v5, %v2924_v54  ;;  %v885_v38 = vmul.f32 %v821_v6, %v2929_v59  ;;  %v884_v44 = vmul.f32 %v820_v17, %v2940_v7  ;;  %v2973_v45 = vadd.f32 %v573_v61, %v2851_v34 }
 0x17b   : > { %v577_v22 = vpop.f32.mrb[12].mxu0  ;;  %v690_v23 = vpop.f32.mrb[12].mxu1  ;;  %v2976_v46 = vadd.f32 %v686_v63, %v2853_v35  ;;  %v2984_v51 = vmul.f32 %v878_v14, %v2904_v36  ;;  %v2987_v55 = vmul.f32 %v879_v15, %v2907_v37  ;;  %v2990_v56 = vmul.f32 %v881_v16, %v2912_v41 }
 0x17c   : > { %v579_v39 = vpop.f32.mrb[13].mxu0  ;;  %v692_v40 = vpop.f32.mrb[13].mxu1  ;;  %v2979_v47 = vadd.f32 %v577_v22, %v2847_v32  ;;  %v2993_v57 = vadd.f32 %v690_v23, %v2849_v33  ;;  %v2996_v63 = vmul.f32 %v880_v0, %v2918_v52  ;;  %v822_v2 = vmul.f32 0.044715, %v2957_v18 }
 0x17d   : > { %v581_v48 = vpop.f32.mrb[14].mxu0  ;;  %v694_v49 = vpop.f32.mrb[14].mxu1  ;;  %3831 = vst [vmem:[#allocation25_spill] sm:$0xff] %v2984_v51  ;;  %3832 = vst [vmem:[#allocation26_spill] sm:$0xff] %v2987_v55  ;;  %v823_v3 = vmul.f32 0.044715, %v2960_v20  ;;  %v3004_v6 = vmul.f32 %v882_v30, %v2921_v53  ;;  %v3009_v16 = vadd.f32 %v579_v39, %v2851_v34  ;;  %v3014_v0 = vmul.f32 %v883_v31, %v2924_v54 }
 0x17e   : > { %3830 = vst [vmem:[#allocation24_spill] sm:$0xff] %v2979_v47  ;;  %v2981_v50 = vpop.eup %2295  ;;  %3833 = vst [vmem:[#allocation27_spill] sm:$0xff] %v2990_v56  ;;  %v583_v58 = vpop.f32.mrb[15].mxu0  ;;  %v825_v4 = vmul.f32 0.044715, %v2963_v21  ;;  %v3017_v22 = vmul.f32 %v885_v38, %v2929_v59  ;;  %v3020_v23 = vmul.f32 %v884_v44, %v2940_v7  ;;  %v3026_v39 = vadd.f32 %v692_v40, %v2853_v35 }
 0x17f   : > { %3834 = vst [vmem:[#allocation28_spill] sm:$0xff] %v2993_v57  ;;  %v696_v61 = vpop.f32.mrb[15].mxu1  ;;  %3835 = vst [vmem:[#allocation29_spill] sm:$0xff] %v2996_v63  ;;  %v3001_v5 = vpop.eup %2297  ;;  %v824_v14 = vmul.f32 0.044715, %v2973_v45  ;;  %v3029_v12 = vadd.f32 %v581_v48, %v2847_v32  ;;  %v886_v38 = vmul.f32 %v822_v2, %v2957_v18  ;;  %v3037_v59 = vadd.f32 %v694_v49, %v2849_v33 }
 0x180   : > { %3836 = vst [vmem:[#allocation30_spill] sm:$0xff] %v3004_v6  ;;  %v826_v15 = vmul.f32 0.044715, %v2976_v46  ;;  %3837 = vst [vmem:[#allocation31_spill] sm:$0xff] %v3009_v16  ;;  %v3011_v17 = vpop.eup %2299  ;;  %v827_v30 = vmul.f32 0.044715, %v2979_v47  ;;  %v889_v44 = vmul.f32 %v825_v4, %v2963_v21  ;;  %v3048_v49 = vadd.f32 %v696_v61, %v2853_v35 }
 0x181   : > { %3838 = vst [vmem:[#allocation32_spill] sm:$0xff] %v3014_v0  ;;  %3839 = vst [vmem:[#allocation33_spill] sm:$0xff] %v3017_v22  ;;  %v829_v56 = vmul.f32 0.044715, %v2993_v57  ;;  %v828_v41 = vmul.f32 0.044715, %v3009_v16  ;;  %v3031_v31 = vpop.eup %2301  ;;  %v887_v22 = vmul.f32 %v823_v3, %v2960_v20  ;;  %v3045_v3 = vadd.f32 %v583_v58, %v2851_v34 }
 0x182   : > { %3840 = vst [vmem:[#allocation34_spill] sm:$0xff] %v3020_v23  ;;  %3841 = vst [vmem:[#allocation35_spill] sm:$0xff] %v3026_v39  ;;  %v888_v23 = vmul.f32 %v824_v14, %v2973_v45  ;;  %v890_v40 = vmul.f32 %v826_v15, %v2976_v46  ;;  %v830_v48 = vmul.f32 0.044715, %v3026_v39  ;;  %v831_v7 = vmul.f32 0.044715, %v3029_v12 }
 0x183   : > { %3842 = vst [vmem:[#allocation36_spill] sm:$0xff] %v3029_v12  ;;  %3843 = vst [vmem:[#allocation37_spill] sm:$0xff] %v3037_v59  ;;  %v587_v0 = vpop.f32.mrb[16].mxu0  ;;  %v700_v54 = vpop.f32.mrb[16].mxu1  ;;  %v833_v2 = vmul.f32 0.044715, %v3037_v59  ;;  %v891_v15 = vmul.f32 %v827_v30, %v2979_v47  ;;  %v893_v11 = vmul.f32 %v829_v56, %v2993_v57  ;;  %v892_v9 = vmul.f32 %v828_v41, %v3009_v16 }
 0x184   : > { %v589_v10 = vpop.f32.mrb[17].mxu0  ;;  %v702_v55 = vpop.f32.mrb[17].mxu1  ;;  %3844 = vst [vmem:[#allocation38_spill] sm:$0xff] %v3045_v3  ;;  %3845 = vst [vmem:[#allocation39_spill] sm:$0xff] %v3048_v49  ;;  %v3051_v4 = vadd.f32 %v587_v0, %v2847_v32  ;;  %v3057_v6 = vadd.f32 %v700_v54, %v2849_v33  ;;  %v894_v61 = vmul.f32 %v830_v48, %v3026_v39  ;;  %v832_v36 = vmul.f32 0.044715, %v3045_v3 }
 0x185   : > { %v591_v14 = vpop.f32.mrb[18].mxu0  ;;  %v704_v37 = vpop.f32.mrb[18].mxu1  ;;  %v895_v0 = vmul.f32 %v831_v7, %v3029_v12  ;;  %v897_v51 = vmul.f32 %v833_v2, %v3037_v59  ;;  %v3068_v30 = vmul.f32 %v886_v38, %v2957_v18  ;;  %v834_v41 = vmul.f32 0.044715, %v3048_v49 }
 0x186   : > { %3846 = vst [vmem:[#allocation40_spill] sm:$0xff] %v3051_v4  ;;  %3847 = vst [vmem:[#allocation41_spill] sm:$0xff] %v3057_v6  ;;  %v3059_v53 = vpop.f32.mrb[19].mxu0  ;;  %v3061_v58 = vpop.f32.mrb[19].mxu1  ;;  %v835_v54 = vmul.f32 0.044715, %v3051_v4  ;;  %v3074_v63 = vmul.f32 %v887_v22, %v2960_v20  ;;  %v3077_v48 = vmul.f32 %v889_v44, %v2963_v21  ;;  %v3080_v7 = vmul.f32 %v888_v23, %v2973_v45 }
 0x187   : > { %3848 = vst [vmem:[#allocation42_spill] sm:$0xff] %v3068_v30  ;;  %v837_v56 = vmul.f32 0.044715, %v3057_v6  ;;  %v3083_v2 = vadd.f32 %v589_v10, %v2851_v34  ;;  %v3086_v38 = vmul.f32 %v890_v40, %v2976_v46  ;;  %v3089_v30 = vmul.f32 %v891_v15, %v2979_v47 }
 0x188   : > { %3849 = vst [vmem:[#allocation43_spill] sm:$0xff] %v3077_v48  ;;  %v3092_v18 = vmul.f32 %v893_v11, %v2993_v57  ;;  %v896_v22 = vmul.f32 %v832_v36, %v3045_v3  ;;  %v3096_v44 = vmul.f32 %v892_v9, %v3009_v16  ;;  %v3099_v23 = vmul.f32 %v894_v61, %v3026_v39 }
 0x189   : > { %3850 = vst [vmem:[#allocation44_spill] sm:$0xff] %v3083_v2  ;;  %3851 = vst [vmem:[#allocation45_spill] sm:$0xff] %v3089_v30  ;;  %v3102_v10 = vmul.f32 %v895_v0, %v3029_v12  ;;  %v3105_v40 = vmul.f32 %v897_v51, %v3037_v59  ;;  %v898_v30 = vmul.f32 %v834_v41, %v3048_v49  ;;  %v836_v0 = vmul.f32 0.044715, %v3083_v2 }
 0x18a   : > { %3852 = vst [vmem:[#allocation46_spill] sm:$0xff] %v3092_v18  ;;  %3853 = vst [vmem:[#allocation47_spill] sm:$0xff] %v3096_v44  ;;  %v899_v11 = vmul.f32 %v835_v54, %v3051_v4  ;;  %v901_v36 = vmul.f32 %v837_v56, %v3057_v6  ;;  %v996_v9 = vadd.f32 %v2893_v26, %v2858_v42 }
 0x18b   : > { %3854 = vst [vmem:[#allocation48_spill] sm:$0xff] %v3099_v23  ;;  %3855 = vst [vmem:[#allocation49_spill] sm:$0xff] %v3102_v10  ;;  %v597_v48 = vpop.f32.mrb[20].mxu0  ;;  %v710_v15 = vpop.f32.mrb[20].mxu1  ;;  %v3116_v57 = vadd.f32 %v702_v55, %v2853_v35  ;;  %v1000_v51 = vadd.f32 %v2932_v1, %v2868_v60  ;;  %v998_v41 = vadd.f32 %v2896_v27, %v2861_v43 }
 0x18c   : > { %3856 = vst [vmem:[#allocation50_spill] sm:$0xff] %v3105_v40  ;;  %v599_v18 = vpop.f32.mrb[21].mxu0  ;;  %v3112_v61 = vpop.f32.mrb[21].mxu1  ;;  %v3127_v26 = vmul.f32 %v896_v22, %v3045_v3  ;;  %v3130_v40 = vmul.f32 0.5, %v2858_v42  ;;  %v1060_v59 = vmul.f32 0.7978846, %v996_v9  ;;  %v1002_v55 = vadd.f32 %v2943_v8, %v2871_v62 }
 0x18d   : > { %3857 = vst [vmem:[#allocation51_spill] sm:$0xff] %v3116_v57  ;;  %v3122_v54 = vpop.f32.mrb[22].mxu0  ;;  %v3124_v56 = vpop.f32.mrb[22].mxu1  ;;  %v1064_v12 = vmul.f32 0.7978846, %v1000_v51  ;;  %v3139_v47 = vadd.f32 %v591_v14, %v2847_v32  ;;  %v3142_v23 = vadd.f32 %v704_v37, %v2849_v33  ;;  %v3145_v22 = vmul.f32 %v898_v30, %v3048_v49 }
 0x18e   : > { %3858 = vst [vmem:[#allocation52_spill] sm:$0xff] %v3127_v26  ;;  %v3134_v10 = vpop.f32.mrb[23].mxu0  ;;  %v3136_v1 = vpop.f32.mrb[23].mxu1  ;;  %v1062_v27 = vmul.f32 0.7978846, %v998_v41  ;;  %2303 = vtanh.f32 %v1060_v59  ;;  %v1187_v9 = vadd.f32 1.0, %v2981_v50  ;;  %v900_v30 = vmul.f32 %v836_v0, %v3083_v2 }
 0x18f   : > { %3859 = vst [vmem:[#allocation53_spill] sm:$0xff] %v3139_v47  ;;  %3860 = vst [vmem:[#allocation54_spill] sm:$0xff] %v3142_v23  ;;  %v1066_v42 = vmul.f32 0.7978846, %v1002_v55  ;;  %v838_v8 = vmul.f32 0.044715, %v3116_v57  ;;  %2305 = vtanh.f32 %v1064_v12 }
 0x190   : > { %3861 = vst [vmem:[#allocation55_spill] sm:$0xff] %v3145_v22  ;;  %v839_v39 = vmul.f32 0.044715, %v3139_v47  ;;  %v1191_v51 = vadd.f32 1.0, %v3011_v17  ;;  %2307 = vtanh.f32 %v1062_v27  ;;  %v841_v14 = vmul.f32 0.044715, %v3142_v23 }
 0x191   : > { %v1189_v37 = vadd.f32 1.0, %v3001_v5  ;;  %v1193_v41 = vadd.f32 1.0, %v3031_v31  ;;  %2309 = vtanh.f32 %v1066_v42  ;;  %v3156_v59 = vmul.f32 %v1187_v9, %v2881_v13 }
 0x192   : > { %v3159_v50 = vmul.f32 %v1191_v51, %v2898_v28  ;;  %v3173_v31 = vadd.f32 %v3059_v53, %v2851_v34  ;;  %v3177_v13 = vadd.f32 %v3061_v58, %v2853_v35  ;;  %v3184_v27 = vmul.f32 %v899_v11, %v3051_v4 }
 0x193   : > { %v3161_v12 = vpop.f32.mrb[24].mxu0  ;;  %v3163_v55 = vpop.f32.mrb[24].mxu1  ;;  %v3166_v17 = vmul.f32 %v1189_v37, %v2884_v19  ;;  %v3169_v5 = vmul.f32 %v1193_v41, %v2900_v29  ;;  %v902_v19 = vmul.f32 %v838_v8, %v3116_v57  ;;  %v3190_v42 = vadd.f32 %v597_v48, %v2847_v32 }
 0x194   : > { %v3179_v28 = vpop.f32.mrb[25].mxu0  ;;  %v3181_v0 = vpop.f32.mrb[25].mxu1  ;;  %3862 = vst [vmem:[#allocation56_spill] sm:$0xff] %v3184_v27  ;;  %v903_v58 = vmul.f32 %v839_v39, %v3139_v47  ;;  %v905_v51 = vmul.f32 %v841_v14, %v3142_v23  ;;  %v3201_v37 = vadd.f32 %v710_v15, %v2849_v33  ;;  %v3208_v48 = vmul.f32 %v901_v36, %v3057_v6 }
 0x195   : > { %3863 = vst [vmem:[#allocation57_spill] sm:$0xff] %v3190_v42  ;;  %v3192_v53 = vpop.f32.mrb[26].mxu0  ;;  %v3194_v9 = vpop.f32.mrb[26].mxu1  ;;  %v744_v29 = vmul.f32 0.5, %v2868_v60  ;;  %v840_v27 = vmul.f32 0.044715, %v3173_v31  ;;  %v3213_v39 = vadd.f32 %v599_v18, %v2851_v34  ;;  %v3216_v14 = vmul.f32 %v900_v30, %v3083_v2 }
 0x196   : > { %3864 = vst [vmem:[#allocation58_spill] sm:$0xff] %v3201_v37  ;;  %v3203_v8 = vpop.f32.mrb[27].mxu0  ;;  %v3205_v41 = vpop.f32.mrb[27].mxu1  ;;  %3865 = vst [vmem:[#allocation59_spill] sm:$0xff] %v3208_v48  ;;  %v742_v15 = vmul.f32 0.5, %v2861_v43  ;;  %v746_v11 = vmul.f32 0.5, %v2871_v62  ;;  %v3222_v22 = vmul.f32 %v902_v19, %v3116_v57  ;;  %v3227_v60 = vadd.f32 %v3112_v61, %v2853_v35 }
 0x197   : > { %3866 = vst [vmem:[#allocation60_spill] sm:$0xff] %v3216_v14  ;;  %v842_v4 = vmul.f32 0.044715, %v3177_v13  ;;  %v843_v36 = vmul.f32 0.044715, %v3190_v42  ;;  %v1004_v18 = vadd.f32 %v2966_v24, %v2890_v25  ;;  %v3232_v48 = vmul.f32 %v903_v58, %v3139_v47  ;;  %v3870_v19 = vld [vmem:[#allocation29_spill] sm:$0xff] }
 0x198   : > { %3867 = vst [vmem:[#allocation61_spill] sm:$0xff] %v3222_v22  ;;  %v2304_v30 = vpop.eup %2303  ;;  %v3235_v43 = vmul.f32 %v905_v51, %v3142_v23  ;;  %v845_v62 = vmul.f32 0.044715, %v3201_v37  ;;  %v1008_v6 = vadd.f32 %v3870_v19, %v2918_v52  ;;  %v904_v61 = vmul.f32 %v840_v27, %v3173_v31 }
 0x199   : > { %3868 = vst [vmem:[#allocation62_spill] sm:$0xff] %v3232_v48  ;;  %v2306_v22 = vpop.eup %2305  ;;  %v1188_v57 = vadd.f32 1.0, %v2304_v30  ;;  %v844_v14 = vmul.f32 0.044715, %v3213_v39  ;;  %v3243_v24 = vmul.f32 0.5, %v2890_v25  ;;  %v906_v23 = vmul.f32 %v842_v4, %v3177_v13 }
 0x19a   : > { %3869 = vst [vmem:[#allocation63_spill] sm:$0xff] %v3235_v43  ;;  %v2308_v51 = vpop.eup %2307  ;;  %v1192_v43 = vadd.f32 1.0, %v2306_v22  ;;  %v1068_v48 = vmul.f32 0.7978846, %v1004_v18  ;;  %v1072_v47 = vmul.f32 0.7978846, %v1008_v6  ;;  %v907_v27 = vmul.f32 %v843_v36, %v3190_v42 }
 0x19b   : > { %v3245_v2 = vpop.f32.mrb[28].mxu0  ;;  %v3247_v58 = vpop.f32.mrb[28].mxu1  ;;  %v1190_v49 = vadd.f32 1.0, %v2308_v51  ;;  %v846_v26 = vmul.f32 0.044715, %v3227_v60  ;;  %v3255_v25 = vmul.f32 0.5, %v2918_v52  ;;  %v1252_v22 = vmul.f32 %v1188_v57, %v3130_v40 }
 0x19c   : > { %3871 = vst [vmem:[#allocation29_spill] sm:$0xff] %v3245_v2  ;;  %3872 = vst [vmem:[#allocation64_spill] sm:$0xff] %v3247_v58  ;;  %v3250_v19 = vpop.f32.mrb[29].mxu0  ;;  %v2310_v30 = vpop.eup %2309  ;;  %v1256_v4 = vmul.f32 %v1192_v43, %v744_v29  ;;  %2311 = vtanh.f32 %v1068_v48  ;;  %v909_v36 = vmul.f32 %v845_v62, %v3201_v37  ;;  %v908_v51 = vmul.f32 %v844_v14, %v3213_v39  ;;  %v3876_v52 = vld [vmem:[#allocation14_spill] sm:$0xff]  ;;  %v3878_v40 = vld [vmem:[#allocation17_spill] sm:$0xff] }
 0x19d   : > { %3873 = vst [vmem:[#allocation65_spill] sm:$0xff] %v3250_v19  ;;  %v3257_v3 = vpop.f32.mrb[29].mxu1  ;;  %v3259_v44 = vpop.f32.mrb[30].mxu0  ;;  %v1194_v18 = vadd.f32 1.0, %v2310_v30  ;;  %2313 = vtanh.f32 %v1072_v47  ;;  %v3877_v19 = vld [vmem:[#allocation25_spill] sm:$0xff]  ;;  %v1254_v2 = vmul.f32 %v1190_v49, %v742_v15  ;;  %v3879_v29 = vld [vmem:[#allocation30_spill] sm:$0xff]  ;;  %v3275_v43 = vmul.f32 %v904_v61, %v3173_v31 }
 0x19e   : > { %3874 = vst [vmem:[#allocation66_spill] sm:$0xff] %v3257_v3  ;;  %3875 = vst [vmem:[#allocation67_spill] sm:$0xff] %v3259_v44  ;;  %v3262_v6 = vpop.f32.mrb[30].mxu1  ;;  %v3264_v16 = vpop.f32.mrb[31].mxu0  ;;  %v1006_v58 = vadd.f32 %v3877_v19, %v3876_v52  ;;  %v1316_v44 = vpack.c.bf16 %v1256_v4, %v1252_v22  ;;  %v1010_v48 = vadd.f32 %v3879_v29, %v3878_v40  ;;  %v3883_v15 = vld [vmem:[#allocation21_spill] sm:$0xff] }
 0x19f   : > { %v3270_v3 = vpop.f32.mrb[31].mxu1  ;;  %v1258_v57 = vmul.f32 %v1194_v18, %v746_v11  ;;  %v3278_v30 = vmul.f32 %v906_v23, %v3177_v13  ;;  %v3282_v47 = vadd.f32 %v3122_v54, %v2847_v32  ;;  %v3286_v49 = vadd.f32 %v3124_v56, %v2849_v33  ;;  %v3882_v11 = vld [vmem:[#allocation12_spill] sm:$0xff] }
 0x1a0   : > { %v1070_v62 = vmul.f32 0.7978846, %v1006_v58  ;;  %1642 = vmatprep.mubr.bf16.mxu0 %v1316_v44  ;;  %v1074_v19 = vmul.f32 0.7978846, %v1010_v48  ;;  %v1003_v22 = vadd.f32 %v3883_v15, %v3882_v11  ;;  %v3884_v61 = vpack.c.bf16 %v3159_v50, %v3156_v59  ;;  %v3886_v44 = vld [vmem:[#allocation15_spill] sm:$0xff]  ;;  %v3892_v48 = vld [vmem:[#allocation16_spill] sm:$0xff] }
 0x1a1   : > { %3880 = vst [vmem:[#allocation14_spill] sm:$0xff] %v3282_v47  ;;  %v1318_v14 = vpack.c.bf16 %v1258_v57, %v1254_v2  ;;  %3881 = vst [vmem:[#allocation25_spill] sm:$0xff] %v3286_v49  ;;  %v3294_v23 = vmul.f32 %v907_v27, %v3190_v42  ;;  %v910_v54 = vmul.f32 %v846_v26, %v3227_v60  ;;  %v3887_v2 = vld [vmem:[#allocation26_spill] sm:$0xff]  ;;  %v847_v50 = vmul.f32 0.044715, %v3282_v47  ;;  %v3890_v27 = vld [vmem:[#allocation13_spill] sm:$0xff] }
 0x1a2   : > { %1643 = vmatmul.mubr.bf16.vlgmr.msra.gmra.mrb[32].mxu0 %v3884_v61  ;;  %2315 = vtanh.f32 %v1070_v62  ;;  %v1007_v58 = vadd.f32 %v3887_v2, %v3886_v44  ;;  %v3300_v56 = vmul.f32 %v909_v36, %v3201_v37  ;;  %v3303_v4 = vmul.f32 %v908_v51, %v3213_v39  ;;  %v3891_v57 = vld [vmem:[#allocation22_spill] sm:$0xff]  ;;  %v3893_v62 = vld [vmem:[#allocation27_spill] sm:$0xff] }
 0x1a3   : > { %3885 = vst [vmem:[#allocation17_spill] sm:$0xff] %v3294_v23  ;;  %1739 = vmatprep.mubr.bf16.mxu1 %v1318_v14  ;;  %2317 = vtanh.f32 %v1074_v19  ;;  %v1067_v18 = vmul.f32 0.7978846, %v1003_v22  ;;  %v3889_v59 = vpack.c.bf16 %v3169_v5, %v3166_v17  ;;  %v1005_v29 = vadd.f32 %v3891_v57, %v3890_v27 }
 0x1a4   : > { %3888 = vst [vmem:[#allocation30_spill] sm:$0xff] %v3300_v56  ;;  %v1071_v26 = vmul.f32 0.7978846, %v1007_v58  ;;  %v1009_v14 = vadd.f32 %v3893_v62, %v3892_v48  ;;  %v849_v36 = vmul.f32 0.044715, %v3286_v49  ;;  %v3316_v51 = vadd.f32 %v3134_v10, %v2851_v34 }
 0x1a5   : > { %1740 = vmatmul.mubr.bf16.vlgmr.msra.gmra.mrb[32].mxu1 %v3889_v59  ;;  %2319 = vtanh.f32 %v1067_v18  ;;  %v3320_v17 = vadd.f32 %v3136_v1, %v2853_v35  ;;  %v3323_v5 = vmul.f32 %v910_v54, %v3227_v60  ;;  %v1069_v19 = vmul.f32 0.7978846, %v1005_v29 }
 0x1a6   : > { %2321 = vtanh.f32 %v1071_v26  ;;  %v1073_v15 = vmul.f32 0.7978846, %v1009_v14  ;;  %v2312_v22 = vpop.eup %2311  ;;  %v750_v61 = vmul.f32 0.5, %v3876_v52  ;;  %v848_v2 = vmul.f32 0.044715, %v3316_v51 }
 0x1a7   : > { %v850_v58 = vmul.f32 0.044715, %v3320_v17  ;;  %v3330_v10 = vadd.f32 %v3161_v12, %v2847_v32  ;;  %v2314_v18 = vpop.eup %2313  ;;  %v1196_v1 = vadd.f32 1.0, %v2312_v22  ;;  %v754_v59 = vmul.f32 0.5, %v3878_v40 }
 0x1a8   : > { %2323 = vtanh.f32 %v1069_v19  ;;  %v3335_v54 = vadd.f32 %v3163_v55, %v2849_v33  ;;  %v1200_v26 = vadd.f32 1.0, %v2314_v18  ;;  %v911_v52 = vmul.f32 %v847_v50, %v3282_v47 }
 0x1a9   : > { %v913_v57 = vmul.f32 %v849_v36, %v3286_v49  ;;  %2325 = vtanh.f32 %v1073_v15  ;;  %v747_v29 = vmul.f32 0.5, %v3882_v11  ;;  %v912_v12 = vmul.f32 %v848_v2, %v3316_v51 }
 0x1aa   : > { %3894 = vst [vmem:[#allocation12_spill] sm:$0xff] %v3335_v54  ;;  %v914_v62 = vmul.f32 %v850_v58, %v3320_v17  ;;  %v3344_v40 = vadd.f32 %v3179_v28, %v2851_v34  ;;  %v1260_v14 = vmul.f32 %v1196_v1, %v3243_v24  ;;  %v1264_v55 = vmul.f32 %v1200_v26, %v3255_v25 }
 0x1ab   : > { %v851_v19 = vmul.f32 0.044715, %v3330_v10  ;;  %v3351_v50 = vadd.f32 %v3181_v0, %v2853_v35  ;;  %v751_v11 = vmul.f32 0.5, %v3886_v44  ;;  %v749_v15 = vmul.f32 0.5, %v3890_v27 }
 0x1ac   : > { %v2316_v36 = vpop.eup %2315  ;;  %v753_v22 = vmul.f32 0.5, %v3892_v48  ;;  %v853_v28 = vmul.f32 0.044715, %v3335_v54  ;;  %v1320_v58 = vpack.c.bf16 %v1264_v55, %v1260_v14  ;;  %v3358_v25 = vmul.f32 %v911_v52, %v3282_v47  ;;  %v3898_v52 = vld [vmem:[#allocation20_spill] sm:$0xff]  ;;  %v3899_v55 = vld [vmem:[#allocation34_spill] sm:$0xff] }
 0x1ad   : > { %v2318_v2 = vpop.eup %2317  ;;  %v1198_v24 = vadd.f32 1.0, %v2316_v36  ;;  %v3361_v18 = vmul.f32 %v913_v57, %v3286_v49  ;;  %v3364_v1 = vmul.f32 %v912_v12, %v3316_v51  ;;  %v3367_v44 = vmul.f32 %v914_v62, %v3320_v17  ;;  %v3901_v47 = vld [vmem:[#allocation42_spill] sm:$0xff] }
 0x1ae   : > { %3895 = vst [vmem:[#allocation21_spill] sm:$0xff] %v3358_v25  ;;  %v1202_v0 = vadd.f32 1.0, %v2318_v2  ;;  %v852_v27 = vmul.f32 0.044715, %v3344_v40  ;;  %1650 = vmatprep.mubr.bf16.mxu0 %v1320_v58  ;;  %v915_v26 = vmul.f32 %v851_v19, %v3330_v10  ;;  %v854_v14 = vmul.f32 0.044715, %v3351_v50 }
 0x1af   : > { %3896 = vst [vmem:[#allocation15_spill] sm:$0xff] %v3361_v18  ;;  %3897 = vst [vmem:[#allocation26_spill] sm:$0xff] %v3367_v44  ;;  %v2320_v48 = vpop.eup %2319  ;;  %v1012_v36 = vadd.f32 %v3899_v55, %v3898_v52  ;;  %v1016_v57 = vadd.f32 %v3080_v7, %v2973_v45  ;;  %v1262_v12 = vmul.f32 %v1198_v24, %v750_v61  ;;  %v3900_v58 = vld [vmem:[#allocation23_spill] sm:$0xff] }
 0x1b0   : > { %v2322_v2 = vpop.eup %2321  ;;  %v1266_v18 = vmul.f32 %v1202_v0, %v754_v59  ;;  %v1195_v49 = vadd.f32 1.0, %v2320_v48  ;;  %v917_v62 = vmul.f32 %v853_v28, %v3335_v54  ;;  %v1014_v19 = vadd.f32 %v3901_v47, %v3900_v58 }
 0x1b1   : > { %v1199_v56 = vadd.f32 1.0, %v2322_v2  ;;  %v1076_v37 = vmul.f32 0.7978846, %v1012_v36  ;;  %v1080_v25 = vmul.f32 0.7978846, %v1016_v57  ;;  %v1018_v55 = vadd.f32 %v3086_v38, %v2976_v46  ;;  %v3907_v36 = vld [vmem:[#allocation19_spill] sm:$0xff] }
 0x1b2   : > { %v2324_v23 = vpop.eup %2323  ;;  %v1322_v42 = vpack.c.bf16 %v1266_v18, %v1262_v12  ;;  %v1259_v44 = vmul.f32 %v1195_v49, %v747_v29  ;;  %v3383_v7 = vadd.f32 %v3192_v53, %v2847_v32  ;;  %v1078_v28 = vmul.f32 0.7978846, %v1014_v19  ;;  %v3908_v57 = vld [vmem:[#allocation33_spill] sm:$0xff] }
 0x1b3   : > { %v2326_v61 = vpop.eup %2325  ;;  %v1263_v59 = vmul.f32 %v1199_v56, %v751_v11  ;;  %v1197_v24 = vadd.f32 1.0, %v2324_v23  ;;  %2327 = vtanh.f32 %v1076_v37  ;;  %v916_v48 = vmul.f32 %v852_v27, %v3344_v40  ;;  %v3904_v56 = vld [vmem:[#allocation18_spill] sm:$0xff]  ;;  %v3905_v11 = vld [vmem:[#allocation32_spill] sm:$0xff] }
 0x1b4   : > { %3902 = vst [vmem:[#allocation13_spill] sm:$0xff] %v3383_v7  ;;  %1747 = vmatprep.mubr.bf16.mxu1 %v1322_v42  ;;  %v1201_v0 = vadd.f32 1.0, %v2326_v61  ;;  %2329 = vtanh.f32 %v1080_v25  ;;  %v1082_v47 = vmul.f32 0.7978846, %v1018_v55  ;;  %v918_v49 = vmul.f32 %v854_v14, %v3351_v50 }
 0x1b5   : > { %v1319_v18 = vpack.c.bf16 %v1263_v59, %v1259_v44  ;;  %v756_v38 = vmul.f32 0.5, %v3898_v52  ;;  %2331 = vtanh.f32 %v1078_v28  ;;  %v1261_v29 = vmul.f32 %v1197_v24, %v749_v15  ;;  %v3910_v28 = vld [vmem:[#allocation29_spill] sm:$0xff] }
 0x1b6   : > { %v1265_v53 = vmul.f32 %v1201_v0, %v753_v22  ;;  %2333 = vtanh.f32 %v1082_v47  ;;  %v3390_v23 = vadd.f32 %v3194_v9, %v2849_v33  ;;  %v760_v42 = vmul.f32 0.5, %v2973_v45 }
 0x1b7   : > { %1651 = vmatmul.mubr.bf16.gmra.mrb[36].mxu0 %v1319_v18  ;;  %v855_v37 = vmul.f32 0.044715, %v3383_v7  ;;  %v1011_v25 = vadd.f32 %v3905_v11, %v3904_v56  ;;  %v1015_v44 = vadd.f32 %v3074_v63, %v2960_v20  ;;  %v3399_v15 = vmul.f32 %v915_v26, %v3330_v10  ;;  %v3909_v26 = vld [vmem:[#allocation43_spill] sm:$0xff] }
 0x1b8   : > { %3903 = vst [vmem:[#allocation22_spill] sm:$0xff] %v3390_v23  ;;  %v1321_v27 = vpack.c.bf16 %v1265_v53, %v1261_v29  ;;  %v3402_v22 = vmul.f32 %v917_v62, %v3335_v54  ;;  %v3405_v9 = vmul.f32 %v916_v48, %v3344_v40  ;;  %v3408_v45 = vmul.f32 %v918_v49, %v3351_v50  ;;  %v3911_v48 = vld [vmem:[#allocation64_spill] sm:$0xff] }
 0x1b9   : > { %v1075_v14 = vmul.f32 0.7978846, %v1011_v25  ;;  %v1079_v52 = vmul.f32 0.7978846, %v1015_v44  ;;  %v1013_v2 = vadd.f32 %v3908_v57, %v3907_v36  ;;  %v857_v63 = vmul.f32 0.044715, %v3390_v23 }
 0x1ba   : > { %3906 = vst [vmem:[#allocation16_spill] sm:$0xff] %v3402_v22  ;;  %1748 = vmatmul.mubr.bf16.gmra.mrb[36].mxu1 %v1321_v27  ;;  %v1017_v12 = vadd.f32 %v3909_v26, %v2963_v21  ;;  %v3417_v62 = vadd.f32 %v3203_v8, %v2851_v34  ;;  %v3421_v19 = vadd.f32 %v3205_v41, %v2853_v35  ;;  %v758_v55 = vmul.f32 0.5, %v3900_v58 }
 0x1bb   : > { %v919_v61 = vmul.f32 %v855_v37, %v3383_v7  ;;  %2335 = vtanh.f32 %v1075_v14  ;;  %v1077_v59 = vmul.f32 0.7978846, %v1013_v2  ;;  %v3427_v0 = vadd.f32 %v3910_v28, %v2847_v32  ;;  %v3913_v2 = vld [vmem:[#allocation65_spill] sm:$0xff]  ;;  %v3915_v28 = vld [vmem:[#allocation66_spill] sm:$0xff] }
 0x1bc   : > { %2337 = vtanh.f32 %v1079_v52  ;;  %v1081_v24 = vmul.f32 0.7978846, %v1017_v12  ;;  %v3431_v8 = vadd.f32 %v3911_v48, %v2849_v33  ;;  %v762_v41 = vmul.f32 0.5, %v2976_v46 }
 0x1bd   : > { %v2328_v47 = vpop.eup %2327  ;;  %v755_v18 = vmul.f32 0.5, %v3904_v56  ;;  %2339 = vtanh.f32 %v1077_v59  ;;  %v856_v58 = vmul.f32 0.044715, %v3417_v62  ;;  %v921_v53 = vmul.f32 %v857_v63, %v3390_v23 }
 0x1be   : > { %v2330_v49 = vpop.eup %2329  ;;  %v1204_v29 = vadd.f32 1.0, %v2328_v47  ;;  %2341 = vtanh.f32 %v1081_v24  ;;  %v858_v37 = vmul.f32 0.044715, %v3421_v19  ;;  %v3439_v44 = vmul.f32 %v919_v61, %v3383_v7 }
 0x1bf   : > { %v2332_v11 = vpop.eup %2331  ;;  %v1208_v25 = vadd.f32 1.0, %v2330_v49  ;;  %v759_v27 = vmul.f32 0.5, %v2960_v20  ;;  %v757_v46 = vmul.f32 0.5, %v3907_v36  ;;  %v859_v52 = vmul.f32 0.044715, %v3427_v0 }
 0x1c0   : > { %3912 = vst [vmem:[#allocation27_spill] sm:$0xff] %v3439_v44  ;;  %v2334_v56 = vpop.eup %2333  ;;  %v1206_v14 = vadd.f32 1.0, %v2332_v11  ;;  %v861_v57 = vmul.f32 0.044715, %v3431_v8  ;;  %v3447_v63 = vadd.f32 %v3913_v2, %v2851_v34  ;;  %v1268_v26 = vmul.f32 %v1204_v29, %v756_v38  ;;  %v3916_v2 = vld [vmem:[#allocation31_spill] sm:$0xff] }
 0x1c1   : > { %v1272_v12 = vmul.f32 %v1208_v25, %v760_v42  ;;  %v1210_v59 = vadd.f32 1.0, %v2334_v56  ;;  %v920_v61 = vmul.f32 %v856_v58, %v3417_v62  ;;  %v3451_v24 = vmul.f32 %v921_v53, %v3390_v23  ;;  %v3917_v38 = vld [vmem:[#allocation47_spill] sm:$0xff]  ;;  %v3918_v25 = vld [vmem:[#allocation38_spill] sm:$0xff] }
 0x1c2   : > { %v761_v20 = vmul.f32 0.5, %v2963_v21  ;;  %v922_v36 = vmul.f32 %v858_v37, %v3421_v19  ;;  %v3457_v48 = vadd.f32 %v3915_v28, %v2853_v35  ;;  %v1270_v49 = vmul.f32 %v1206_v14, %v758_v55  ;;  %v3919_v21 = vld [vmem:[#allocation52_spill] sm:$0xff]  ;;  %v3923_v23 = vld [vmem:[#allocation55_spill] sm:$0xff] }
 0x1c3   : > { %3914 = vst [vmem:[#allocation20_spill] sm:$0xff] %v3451_v24  ;;  %v1324_v47 = vpack.c.bf16 %v1272_v12, %v1268_v26  ;;  %v1274_v11 = vmul.f32 %v1210_v59, %v762_v41  ;;  %v1020_v42 = vadd.f32 %v3917_v38, %v3916_v2  ;;  %v923_v29 = vmul.f32 %v859_v52, %v3427_v0  ;;  %v3920_v41 = vld [vmem:[#allocation35_spill] sm:$0xff]  ;;  %v3921_v14 = vld [vmem:[#allocation48_spill] sm:$0xff] }
 0x1c4   : > { %v925_v58 = vmul.f32 %v861_v57, %v3431_v8  ;;  %v860_v53 = vmul.f32 0.044715, %v3447_v63  ;;  %v1024_v56 = vadd.f32 %v3919_v21, %v3918_v25  ;;  %v3467_v28 = vmul.f32 %v920_v61, %v3417_v62  ;;  %v3922_v38 = vld [vmem:[#allocation39_spill] sm:$0xff] }
 0x1c5   : > { %v2336_v37 = vpop.eup %2335  ;;  %1658 = vmatprep.mubr.bf16.mxu0 %v1324_v47  ;;  %v1326_v24 = vpack.c.bf16 %v1274_v11, %v1270_v49  ;;  %v1084_v55 = vmul.f32 0.7978846, %v1020_v42  ;;  %v1022_v26 = vadd.f32 %v3921_v14, %v3920_v41  ;;  %v862_v52 = vmul.f32 0.044715, %v3457_v48 }
 0x1c6   : > { %v2338_v12 = vpop.eup %2337  ;;  %v1203_v59 = vadd.f32 1.0, %v2336_v37  ;;  %v1088_v57 = vmul.f32 0.7978846, %v1024_v56  ;;  %v1026_v22 = vadd.f32 %v3923_v23, %v3922_v38  ;;  %v3475_v47 = vmul.f32 %v922_v36, %v3421_v19  ;;  %v3924_v37 = vld [vmem:[#allocation67_spill] sm:$0xff] }
 0x1c7   : > { %v2340_v54 = vpop.eup %2339  ;;  %1755 = vmatprep.mubr.bf16.mxu1 %v1326_v24  ;;  %v1207_v21 = vadd.f32 1.0, %v2338_v12  ;;  %2343 = vtanh.f32 %v1084_v55  ;;  %v1086_v61 = vmul.f32 0.7978846, %v1022_v26  ;;  %v3479_v14 = vadd.f32 %v3924_v37, %v2847_v32  ;;  %v3927_v12 = vld [vmem:[#allocation45_spill] sm:$0xff]  ;;  %v3933_v37 = vld [vmem:[#allocation50_spill] sm:$0xff] }
 0x1c8   : > { %v2342_v49 = vpop.eup %2341  ;;  %v1267_v11 = vmul.f32 %v1203_v59, %v755_v18  ;;  %v1205_v42 = vadd.f32 1.0, %v2340_v54  ;;  %2345 = vtanh.f32 %v1088_v57  ;;  %v1090_v7 = vmul.f32 0.7978846, %v1026_v22  ;;  %v3926_v22 = vld [vmem:[#allocation24_spill] sm:$0xff]  ;;  %v3929_v57 = vld [vmem:[#allocation49_spill] sm:$0xff] }
 0x1c9   : > { %v1271_v56 = vmul.f32 %v1207_v21, %v759_v27  ;;  %v1209_v44 = vadd.f32 1.0, %v2342_v49  ;;  %2347 = vtanh.f32 %v1086_v61  ;;  %v3482_v23 = vmul.f32 %v923_v29, %v3427_v0  ;;  %v3928_v29 = vld [vmem:[#allocation36_spill] sm:$0xff] }
 0x1ca   : > { %v3485_v24 = vmul.f32 %v925_v58, %v3431_v8  ;;  %v924_v36 = vmul.f32 %v860_v53, %v3447_v63  ;;  %v926_v18 = vmul.f32 %v862_v52, %v3457_v48  ;;  %v1269_v55 = vmul.f32 %v1205_v42, %v757_v46  ;;  %v3932_v42 = vld [vmem:[#allocation37_spill] sm:$0xff] }
 0x1cb   : > { %v1323_v54 = vpack.c.bf16 %v1271_v56, %v1267_v11  ;;  %v1273_v26 = vmul.f32 %v1209_v44, %v761_v20  ;;  %2349 = vtanh.f32 %v1090_v7  ;;  %v764_v32 = vmul.f32 0.5, %v3916_v2  ;;  %v3930_v44 = vld [vmem:[#allocation28_spill] sm:$0xff]  ;;  %v3931_v7 = vld [vmem:[#allocation46_spill] sm:$0xff] }
 0x1cc   : > { %3925 = vst [vmem:[#allocation34_spill] sm:$0xff] %v3485_v24  ;;  %v863_v27 = vmul.f32 0.044715, %v3479_v14  ;;  %v1019_v59 = vadd.f32 %v3927_v12, %v3926_v22  ;;  %v1023_v21 = vadd.f32 %v3929_v57, %v3928_v29  ;;  %v768_v53 = vmul.f32 0.5, %v3918_v25  ;;  %v3945_v24 = vld [vmem:[#allocation63_spill] sm:$0xff] }
 0x1cd   : > { %1659 = vmatmul.mubr.bf16.gmra.mrb[40].mxu0 %v1323_v54  ;;  %v1325_v58 = vpack.c.bf16 %v1273_v26, %v1269_v55  ;;  %v3498_v52 = vadd.f32 %v3262_v6, %v2849_v33  ;;  %v1021_v46 = vadd.f32 %v3931_v7, %v3930_v44  ;;  %v3503_v20 = vmul.f32 %v924_v36, %v3447_v63 }
 0x1ce   : > { %v766_v2 = vmul.f32 0.5, %v3920_v41  ;;  %v1083_v61 = vmul.f32 0.7978846, %v1019_v59  ;;  %v1087_v49 = vmul.f32 0.7978846, %v1023_v21  ;;  %v3507_v11 = vmul.f32 %v926_v18, %v3457_v48  ;;  %v3935_v59 = vld [vmem:[#allocation60_spill] sm:$0xff] }
 0x1cf   : > { %1756 = vmatmul.mubr.bf16.gmra.mrb[40].mxu1 %v1325_v58  ;;  %v770_v25 = vmul.f32 0.5, %v3922_v38  ;;  %v1025_v33 = vadd.f32 %v3933_v37, %v3932_v42  ;;  %v1085_v6 = vmul.f32 0.7978846, %v1021_v46  ;;  %v927_v56 = vmul.f32 %v863_v27, %v3479_v14  ;;  %v3934_v27 = vld [vmem:[#allocation44_spill] sm:$0xff] }
 0x1d0   : > { %v3514_v54 = vmul.f32 0.5, %v3926_v22  ;;  %v3517_v36 = vmul.f32 0.5, %v3928_v29  ;;  %2351 = vtanh.f32 %v1083_v61  ;;  %v865_v55 = vmul.f32 0.044715, %v3498_v52 }
 0x1d1   : > { %v2344_v41 = vpop.eup %2343  ;;  %2353 = vtanh.f32 %v1087_v49  ;;  %v1089_v18 = vmul.f32 0.7978846, %v1025_v33  ;;  %v3522_v38 = vadd.f32 %v3264_v16, %v2851_v34  ;;  %v1028_v22 = vadd.f32 %v3935_v59, %v3934_v27  ;;  %v3938_v59 = vld [vmem:[#allocation40_spill] sm:$0xff] }
 0x1d2   : > { %v2346_v26 = vpop.eup %2345  ;;  %v1212_v12 = vadd.f32 1.0, %v2344_v41  ;;  %2355 = vtanh.f32 %v1085_v6  ;;  %v1032_v29 = vadd.f32 %v3275_v43, %v3173_v31  ;;  %v765_v58 = vmul.f32 0.5, %v3930_v44 }
 0x1d3   : > { %v2348_v57 = vpop.eup %2347  ;;  %v1216_v21 = vadd.f32 1.0, %v2346_v26  ;;  %v769_v7 = vmul.f32 0.5, %v3932_v42  ;;  %2357 = vtanh.f32 %v1089_v18  ;;  %v3532_v34 = vadd.f32 %v3270_v3, %v2853_v35  ;;  %v3936_v35 = vld [vmem:[#allocation51_spill] sm:$0xff]  ;;  %v3937_v3 = vld [vmem:[#allocation61_spill] sm:$0xff] }
 0x1d4   : > { %v1214_v46 = vadd.f32 1.0, %v2348_v57  ;;  %v1092_v16 = vmul.f32 0.7978846, %v1028_v22  ;;  %v1096_v61 = vmul.f32 0.7978846, %v1032_v29  ;;  %v1276_v37 = vmul.f32 %v1212_v12, %v764_v32  ;;  %v3939_v22 = vld [vmem:[#allocation56_spill] sm:$0xff] }
 0x1d5   : > { %v2350_v49 = vpop.eup %2349  ;;  %v1280_v33 = vmul.f32 %v1216_v21, %v768_v53  ;;  %v3535_v6 = vmul.f32 %v927_v56, %v3479_v14  ;;  %v864_v43 = vmul.f32 0.044715, %v3522_v38  ;;  %v3539_v44 = vmul.f32 %v865_v55, %v3498_v52  ;;  %v3940_v21 = vld [vmem:[#allocation53_spill] sm:$0xff] }
 0x1d6   : > { %v1218_v41 = vadd.f32 1.0, %v2350_v49  ;;  %v772_v42 = vmul.f32 0.5, %v3934_v27  ;;  %2359 = vtanh.f32 %v1092_v16  ;;  %v1030_v26 = vadd.f32 %v3937_v3, %v3936_v35  ;;  %v3941_v16 = vld [vmem:[#allocation62_spill] sm:$0xff] }
 0x1d7   : > { %v1328_v18 = vpack.c.bf16 %v1280_v33, %v1276_v37  ;;  %2361 = vtanh.f32 %v1096_v61  ;;  %v1034_v32 = vadd.f32 %v3278_v30, %v3177_v13  ;;  %v1278_v53 = vmul.f32 %v1214_v46, %v766_v2  ;;  %v3942_v2 = vld [vmem:[#allocation41_spill] sm:$0xff] }
 0x1d8   : > { %v1282_v56 = vmul.f32 %v1218_v41, %v770_v25  ;;  %v866_v12 = vmul.f32 0.044715, %v3532_v34  ;;  %v1027_v29 = vadd.f32 %v3939_v22, %v3938_v59  ;;  %v928_v55 = vmul.f32 %v864_v43, %v3522_v38  ;;  %v3943_v25 = vld [vmem:[#allocation59_spill] sm:$0xff] }
 0x1d9   : > { %1666 = vmatprep.mubr.bf16.mxu0 %v1328_v18  ;;  %v1094_v27 = vmul.f32 0.7978846, %v1030_v26  ;;  %v1098_v57 = vmul.f32 0.7978846, %v1034_v32  ;;  %v1031_v61 = vadd.f32 %v3941_v16, %v3940_v21  ;;  %v776_v33 = vmul.f32 0.5, %v3173_v31  ;;  %v3944_v18 = vld [vmem:[#allocation54_spill] sm:$0xff] }
 0x1da   : > { %v2352_v49 = vpop.eup %2351  ;;  %v1330_v37 = vpack.c.bf16 %v1282_v56, %v1278_v53  ;;  %v1091_v30 = vmul.f32 0.7978846, %v1027_v29  ;;  %v1029_v46 = vadd.f32 %v3943_v25, %v3942_v2  ;;  %v1033_v43 = vadd.f32 %v3945_v24, %v3944_v18 }
 0x1db   : > { %v2354_v41 = vpop.eup %2353  ;;  %v1211_v3 = vadd.f32 1.0, %v2352_v49  ;;  %2363 = vtanh.f32 %v1094_v27  ;;  %v1095_v22 = vmul.f32 0.7978846, %v1031_v61  ;;  %v3558_v16 = vmul.f32 %v866_v12, %v3532_v34 }
 0x1dc   : > { %v2356_v26 = vpop.eup %2355  ;;  %1763 = vmatprep.mubr.bf16.mxu1 %v1330_v37  ;;  %v1215_v32 = vadd.f32 1.0, %v2354_v41  ;;  %2365 = vtanh.f32 %v1098_v57  ;;  %v1093_v53 = vmul.f32 0.7978846, %v1029_v46  ;;  %v3561_v29 = vmul.f32 %v928_v55, %v3522_v38 }
 0x1dd   : > { %v2358_v31 = vpop.eup %2357  ;;  %v1213_v56 = vadd.f32 1.0, %v2356_v26  ;;  %2367 = vtanh.f32 %v1091_v30  ;;  %v1097_v49 = vmul.f32 0.7978846, %v1033_v43  ;;  %v1275_v27 = vmul.f32 %v1211_v3, %v3514_v54  ;;  %v3946_v26 = vld [vmem:[#allocation26_spill] sm:$0xff] }
 0x1de   : > { %v1279_v61 = vmul.f32 %v1215_v32, %v3517_v36  ;;  %v1217_v24 = vadd.f32 1.0, %v2358_v31  ;;  %2369 = vtanh.f32 %v1095_v22  ;;  %v774_v37 = vmul.f32 0.5, %v3936_v35 }
 0x1df   : > { %2371 = vtanh.f32 %v1093_v53  ;;  %v1036_v12 = vadd.f32 %v3303_v4, %v3213_v39  ;;  %v1040_v57 = vadd.f32 %v3364_v1, %v3316_v51  ;;  %v1277_v46 = vmul.f32 %v1213_v56, %v765_v58 }
 0x1e0   : > { %v2360_v25 = vpop.eup %2359  ;;  %v1327_v55 = vpack.c.bf16 %v1279_v61, %v1275_v27  ;;  %v1281_v30 = vmul.f32 %v1217_v24, %v769_v7  ;;  %2373 = vtanh.f32 %v1097_v49  ;;  %v778_v36 = vmul.f32 0.5, %v3177_v13  ;;  %v3948_v61 = vld [vmem:[#allocation17_spill] sm:$0xff] }
 0x1e1   : > { %v2362_v41 = vpop.eup %2361  ;;  %v1220_v54 = vadd.f32 1.0, %v2360_v25  ;;  %v1100_v3 = vmul.f32 0.7978846, %v1036_v12  ;;  %v1104_v22 = vmul.f32 0.7978846, %v1040_v57  ;;  %v1038_v4 = vadd.f32 %v3323_v5, %v3227_v60  ;;  %v3947_v5 = vld [vmem:[#allocation57_spill] sm:$0xff] }
 0x1e2   : > { %1667 = vmatmul.mubr.bf16.gmra.mrb[44].mxu0 %v1327_v55  ;;  %v1329_v35 = vpack.c.bf16 %v1281_v30, %v1277_v46  ;;  %v1224_v43 = vadd.f32 1.0, %v2362_v41  ;;  %v1042_v1 = vadd.f32 %v3946_v26, %v3320_v17  ;;  %v771_v58 = vmul.f32 0.5, %v3938_v59  ;;  %v3949_v12 = vld [vmem:[#allocation14_spill] sm:$0xff] }
 0x1e3   : > { %v1284_v32 = vmul.f32 %v1220_v54, %v772_v42  ;;  %v775_v7 = vmul.f32 0.5, %v3940_v21  ;;  %2375 = vtanh.f32 %v1100_v3  ;;  %v1102_v13 = vmul.f32 0.7978846, %v1038_v4  ;;  %v3950_v42 = vld [vmem:[#allocation21_spill] sm:$0xff]  ;;  %v3951_v55 = vld [vmem:[#allocation58_spill] sm:$0xff] }
 0x1e4   : > { %1764 = vmatmul.mubr.bf16.gmra.mrb[44].mxu1 %v1329_v35  ;;  %v1288_v53 = vmul.f32 %v1224_v43, %v776_v33  ;;  %2377 = vtanh.f32 %v1104_v22  ;;  %v1106_v31 = vmul.f32 0.7978846, %v1042_v1  ;;  %v773_v49 = vmul.f32 0.5, %v3942_v2  ;;  %v3952_v33 = vld [vmem:[#allocation30_spill] sm:$0xff]  ;;  %v3953_v35 = vld [vmem:[#allocation25_spill] sm:$0xff]  ;;  %v3954_v43 = vld [vmem:[#allocation15_spill] sm:$0xff] }
 0x1e5   : > { %v2364_v56 = vpop.eup %2363  ;;  %v777_v27 = vmul.f32 0.5, %v3944_v18  ;;  %v1035_v24 = vadd.f32 %v3948_v61, %v3947_v5  ;;  %v1039_v57 = vadd.f32 %v3950_v42, %v3949_v12  ;;  %2379 = vtanh.f32 %v1102_v13 }
 0x1e6   : > { %v2366_v59 = vpop.eup %2365  ;;  %v1332_v25 = vpack.c.bf16 %v1288_v53, %v1284_v32  ;;  %v1222_v21 = vadd.f32 1.0, %v2364_v56  ;;  %v1037_v46 = vadd.f32 %v3952_v33, %v3951_v55  ;;  %2381 = vtanh.f32 %v1106_v31 }
 0x1e7   : > { %v2368_v30 = vpop.eup %2367  ;;  %v1226_v41 = vadd.f32 1.0, %v2366_v59  ;;  %v1099_v54 = vmul.f32 0.7978846, %v1035_v24  ;;  %v1103_v2 = vmul.f32 0.7978846, %v1039_v57  ;;  %v780_v22 = vmul.f32 0.5, %v3213_v39 }
 0x1e8   : > { %v2370_v3 = vpop.eup %2369  ;;  %1674 = vmatprep.mubr.bf16.mxu0 %v1332_v25  ;;  %v1219_v18 = vadd.f32 1.0, %v2368_v30  ;;  %v1041_v4 = vadd.f32 %v3954_v43, %v3953_v35  ;;  %v1101_v26 = vmul.f32 0.7978846, %v1037_v46  ;;  %v1286_v32 = vmul.f32 %v1222_v21, %v774_v37 }
 0x1e9   : > { %v2372_v1 = vpop.eup %2371  ;;  %v1290_v53 = vmul.f32 %v1226_v41, %v778_v36  ;;  %v1223_v13 = vadd.f32 1.0, %v2370_v3  ;;  %2383 = vtanh.f32 %v1099_v54  ;;  %v784_v39 = vmul.f32 0.5, %v3316_v51 }
 0x1ea   : > { %v2374_v56 = vpop.eup %2373  ;;  %v1283_v61 = vmul.f32 %v1219_v18, %v771_v58  ;;  %v1221_v42 = vadd.f32 1.0, %v2372_v1  ;;  %2385 = vtanh.f32 %v1103_v2  ;;  %v1105_v31 = vmul.f32 0.7978846, %v1041_v4 }
 0x1eb   : > { %v1334_v24 = vpack.c.bf16 %v1290_v53, %v1286_v32  ;;  %v1287_v57 = vmul.f32 %v1223_v13, %v775_v7  ;;  %v1225_v59 = vadd.f32 1.0, %v2374_v56  ;;  %2387 = vtanh.f32 %v1101_v26  ;;  %v3956_v13 = vld [vmem:[#allocation27_spill] sm:$0xff] }
 0x1ec   : > { %v782_v25 = vmul.f32 0.5, %v3227_v60  ;;  %2389 = vtanh.f32 %v1105_v31  ;;  %v1044_v37 = vadd.f32 %v3405_v9, %v3344_v40  ;;  %v1285_v33 = vmul.f32 %v1221_v42, %v773_v49 }
 0x1ed   : > { %v2376_v36 = vpop.eup %2375  ;;  %1771 = vmatprep.mubr.bf16.mxu1 %v1334_v24  ;;  %v1331_v21 = vpack.c.bf16 %v1287_v57, %v1283_v61  ;;  %v1289_v58 = vmul.f32 %v1225_v59, %v777_v27  ;;  %v1048_v46 = vadd.f32 %v3467_v28, %v3417_v62  ;;  %v786_v41 = vmul.f32 0.5, %v3320_v17 }
 0x1ee   : > { %v2378_v30 = vpop.eup %2377  ;;  %v1228_v7 = vadd.f32 1.0, %v2376_v36  ;;  %v1108_v54 = vmul.f32 0.7978846, %v1044_v37  ;;  %v1046_v60 = vadd.f32 %v3408_v45, %v3351_v50  ;;  %v1050_v3 = vadd.f32 %v3475_v47, %v3421_v19  ;;  %v3958_v36 = vld [vmem:[#allocation16_spill] sm:$0xff] }
 0x1ef   : > { %1675 = vmatmul.mubr.bf16.gmra.mrb[48].mxu0 %v1331_v21  ;;  %v1333_v51 = vpack.c.bf16 %v1289_v58, %v1285_v33  ;;  %v1232_v2 = vadd.f32 1.0, %v2378_v30  ;;  %v1112_v9 = vmul.f32 0.7978846, %v1048_v46  ;;  %v2380_v49 = vpop.eup %2379  ;;  %v779_v18 = vmul.f32 0.5, %v3947_v5  ;;  %v3955_v5 = vld [vmem:[#allocation13_spill] sm:$0xff] }
 0x1f0   : > { %v1292_v27 = vmul.f32 %v1228_v7, %v780_v22  ;;  %2391 = vtanh.f32 %v1108_v54  ;;  %v1110_v28 = vmul.f32 0.7978846, %v1046_v60  ;;  %v2382_v43 = vpop.eup %2381  ;;  %v1230_v4 = vadd.f32 1.0, %v2380_v49 }
 0x1f1   : > { %1772 = vmatmul.mubr.bf16.gmra.mrb[48].mxu1 %v1333_v51  ;;  %v1296_v17 = vmul.f32 %v1232_v2, %v784_v39  ;;  %2393 = vtanh.f32 %v1112_v9  ;;  %v1114_v26 = vmul.f32 0.7978846, %v1050_v3  ;;  %v1234_v45 = vadd.f32 1.0, %v2382_v43 }
 0x1f2   : > { %v783_v1 = vmul.f32 0.5, %v3949_v12  ;;  %2395 = vtanh.f32 %v1110_v28  ;;  %v1043_v32 = vadd.f32 %v3399_v15, %v3330_v10  ;;  %v781_v22 = vmul.f32 0.5, %v3951_v55  ;;  %v3957_v15 = vld [vmem:[#allocation12_spill] sm:$0xff] }
 0x1f3   : > { %v2384_v47 = vpop.eup %2383  ;;  %v1336_v53 = vpack.c.bf16 %v1296_v17, %v1292_v27  ;;  %2397 = vtanh.f32 %v1114_v26  ;;  %v1047_v56 = vadd.f32 %v3956_v13, %v3955_v5  ;;  %v1294_v42 = vmul.f32 %v1230_v4, %v782_v25  ;;  %v3959_v25 = vld [vmem:[#allocation22_spill] sm:$0xff] }
 0x1f4   : > { %v2386_v61 = vpop.eup %2385  ;;  %v1298_v31 = vmul.f32 %v1234_v45, %v786_v41  ;;  %v1227_v24 = vadd.f32 1.0, %v2384_v47  ;;  %v1107_v57 = vmul.f32 0.7978846, %v1043_v32  ;;  %v785_v39 = vmul.f32 0.5, %v3953_v35  ;;  %v3960_v41 = vld [vmem:[#allocation20_spill] sm:$0xff] }
 0x1f5   : > { %v2388_v59 = vpop.eup %2387  ;;  %1682 = vmatprep.mubr.bf16.mxu0 %v1336_v53  ;;  %v1231_v12 = vadd.f32 1.0, %v2386_v61  ;;  %v1111_v37 = vmul.f32 0.7978846, %v1047_v56  ;;  %v1045_v21 = vadd.f32 %v3958_v36, %v3957_v15  ;;  %v1049_v54 = vadd.f32 %v3960_v41, %v3959_v25 }
 0x1f6   : > { %v2390_v33 = vpop.eup %2389  ;;  %v1338_v55 = vpack.c.bf16 %v1298_v31, %v1294_v42  ;;  %v1291_v58 = vmul.f32 %v1227_v24, %v779_v18  ;;  %v1229_v46 = vadd.f32 1.0, %v2388_v59  ;;  %2399 = vtanh.f32 %v1107_v57 }
 0x1f7   : > { %v1295_v30 = vmul.f32 %v1231_v12, %v783_v1  ;;  %v1233_v7 = vadd.f32 1.0, %v2390_v33  ;;  %2401 = vtanh.f32 %v1111_v37  ;;  %v994_v60 = vmul.f32 %v3558_v16, %v3532_v34 }
 0x1f8   : > { %1779 = vmatprep.mubr.bf16.mxu1 %v1338_v55  ;;  %v1293_v35 = vmul.f32 %v1229_v46, %v781_v22  ;;  %v788_v51 = vmul.f32 0.5, %v3344_v40  ;;  %v1109_v2 = vmul.f32 0.7978846, %v1045_v21  ;;  %v1113_v49 = vmul.f32 0.7978846, %v1049_v54 }
 0x1f9   : > { %v1335_v9 = vpack.c.bf16 %v1295_v30, %v1291_v58  ;;  %v1297_v3 = vmul.f32 %v1233_v7, %v785_v39  ;;  %v1052_v27 = vadd.f32 %v3503_v20, %v3447_v63  ;;  %v792_v28 = vmul.f32 0.5, %v3417_v62 }
 0x1fa   : > { %v2392_v18 = vpop.eup %2391  ;;  %v790_v43 = vmul.f32 0.5, %v3351_v50  ;;  %2403 = vtanh.f32 %v1109_v2  ;;  %v1056_v16 = vadd.f32 %v3561_v29, %v3522_v38  ;;  %v1054_v20 = vadd.f32 %v3507_v11, %v3457_v48 }
 0x1fb   : > { %v2394_v17 = vpop.eup %2393  ;;  %1683 = vmatmul.mubr.bf16.gmra.mrb[52].mxu0 %v1335_v9  ;;  %v1337_v4 = vpack.c.bf16 %v1297_v3, %v1293_v35  ;;  %v1236_v40 = vadd.f32 1.0, %v2392_v18  ;;  %2405 = vtanh.f32 %v1113_v49  ;;  %v1116_v26 = vmul.f32 0.7978846, %v1052_v27 }
 0x1fc   : > { %v2396_v45 = vpop.eup %2395  ;;  %v1240_v1 = vadd.f32 1.0, %v2394_v17  ;;  %v1120_v32 = vmul.f32 0.7978846, %v1056_v16  ;;  %v1058_v62 = vadd.f32 %v994_v60, %v3532_v34  ;;  %v794_v53 = vmul.f32 0.5, %v3421_v19 }
 0x1fd   : > { %v2398_v47 = vpop.eup %2397  ;;  %1780 = vmatmul.mubr.bf16.gmra.mrb[52].mxu1 %v1337_v4  ;;  %v1300_v50 = vmul.f32 %v1236_v40, %v788_v51  ;;  %v1238_v29 = vadd.f32 1.0, %v2396_v45  ;;  %2407 = vtanh.f32 %v1116_v26  ;;  %v1118_v56 = vmul.f32 0.7978846, %v1054_v20 }
 0x1fe   : > { %v1304_v22 = vmul.f32 %v1240_v1, %v792_v28  ;;  %v1242_v13 = vadd.f32 1.0, %v2398_v47  ;;  %2409 = vtanh.f32 %v1120_v32  ;;  %v993_v61 = vmul.f32 %v3539_v44, %v3498_v52 }
 0x1ff   : > { %v1302_v42 = vmul.f32 %v1238_v29, %v790_v43  ;;  %v1122_v31 = vmul.f32 0.7978846, %v1058_v62  ;;  %v1051_v11 = vadd.f32 %v3482_v23, %v3427_v0  ;;  %2411 = vtanh.f32 %v1118_v56  ;;  %v3961_v23 = vld [vmem:[#allocation34_spill] sm:$0xff] }
 0x200   : > { %v2400_v24 = vpop.eup %2399  ;;  %v1340_v57 = vpack.c.bf16 %v1304_v22, %v1300_v50  ;;  %v1306_v59 = vmul.f32 %v1242_v13, %v794_v53  ;;  %v1055_v19 = vadd.f32 %v3535_v6, %v3479_v14  ;;  %v787_v39 = vmul.f32 0.5, %v3330_v10 }
 0x201   : > { %v2402_v12 = vpop.eup %2401  ;;  %v1235_v37 = vadd.f32 1.0, %v2400_v24  ;;  %2413 = vtanh.f32 %v1122_v31  ;;  %v1115_v36 = vmul.f32 0.7978846, %v1051_v11  ;;  %v791_v21 = vmul.f32 0.5, %v3955_v5 }
 0x202   : > { %1690 = vmatprep.mubr.bf16.mxu0 %v1340_v57  ;;  %v1342_v44 = vpack.c.bf16 %v1306_v59, %v1302_v42  ;;  %v1239_v33 = vadd.f32 1.0, %v2402_v12  ;;  %v1119_v55 = vmul.f32 0.7978846, %v1055_v19  ;;  %v1053_v58 = vadd.f32 %v3961_v23, %v3431_v8  ;;  %v3648_v12 = vld [vmem:[%s3741_s4] ss:$0 sm:$0xff] }
 0x203   : > { %2415 = vtanh.f32 %v1115_v36  ;;  %v1057_v46 = vadd.f32 %v993_v61, %v3498_v52  ;;  %v1299_v6 = vmul.f32 %v1235_v37, %v787_v39  ;;  %v789_v5 = vmul.f32 0.5, %v3957_v15 }
 0x204   : > { %v2404_v30 = vpop.eup %2403  ;;  %1787 = vmatprep.mubr.bf16.mxu1 %v1342_v44  ;;  %v1303_v7 = vmul.f32 %v1239_v33, %v791_v21  ;;  %2417 = vtanh.f32 %v1119_v55  ;;  %v1117_v54 = vmul.f32 0.7978846, %v1053_v58  ;;  %v793_v51 = vmul.f32 0.5, %v3959_v25 }
 0x205   : > { %v2406_v10 = vpop.eup %2405  ;;  %v1237_v41 = vadd.f32 1.0, %v2404_v30  ;;  %v1121_v60 = vmul.f32 0.7978846, %v1057_v46  ;;  %v796_v28 = vmul.f32 0.5, %v3447_v63  ;;  %v800_v43 = vmul.f32 0.5, %v3522_v38 }
 0x206   : > { %v1339_v35 = vpack.c.bf16 %v1303_v7, %v1299_v6  ;;  %v1241_v2 = vadd.f32 1.0, %v2406_v10  ;;  %2419 = vtanh.f32 %v1117_v54  ;;  %v798_v45 = vmul.f32 0.5, %v3457_v48 }
 0x207   : > { %v2408_v9 = vpop.eup %2407  ;;  %v1301_v49 = vmul.f32 %v1237_v41, %v789_v5  ;;  %2421 = vtanh.f32 %v1121_v60  ;;  %v802_v1 = vmul.f32 0.5, %v3532_v34  ;;  %v795_v38 = vmul.f32 0.5, %v3427_v0 }
 0x208   : > { %v2410_v3 = vpop.eup %2409  ;;  %1691 = vmatmul.mubr.bf16.gmra.mrb[56].mxu0 %v1339_v35  ;;  %v1305_v27 = vmul.f32 %v1241_v2, %v793_v51  ;;  %v1244_v18 = vadd.f32 1.0, %v2408_v9  ;;  %v799_v29 = vmul.f32 0.5, %v3479_v14  ;;  %v797_v11 = vmul.f32 0.5, %v3431_v8 }
 0x209   : > { %v1248_v16 = vadd.f32 1.0, %v2410_v3  ;;  %v2412_v17 = vpop.eup %2411  ;;  %v801_v24 = vmul.f32 0.5, %v3498_v52 }
 0x20a   : > { %v1341_v4 = vpack.c.bf16 %v1305_v27, %v1301_v49  ;;  %v1308_v15 = vmul.f32 %v1244_v18, %v796_v28  ;;  %v1246_v25 = vadd.f32 1.0, %v2412_v17 }
 0x20b   : > { %v2414_v40 = vpop.eup %2413  ;;  %v1312_v26 = vmul.f32 %v1248_v16, %v800_v43 }
 0x20c   : > { %1788 = vmatmul.mubr.bf16.gmra.mrb[56].mxu1 %v1341_v4  ;;  %v1250_v32 = vadd.f32 1.0, %v2414_v40  ;;  %v1310_v50 = vmul.f32 %v1246_v25, %v798_v45 }
 0x20d   : > { %v2416_v20 = vpop.eup %2415  ;;  %v1344_v62 = vpack.c.bf16 %v1312_v26, %v1308_v15 }
 0x20e   : > { %v2418_v47 = vpop.eup %2417  ;;  %v1314_v63 = vmul.f32 %v1250_v32, %v802_v1  ;;  %v1243_v53 = vadd.f32 1.0, %v2416_v20 }
 0x20f   : > { %1698 = vmatprep.mubr.bf16.mxu0 %v1344_v62  ;;  %v1247_v22 = vadd.f32 1.0, %v2418_v47 }
 0x210   : > { %v1346_v13 = vpack.c.bf16 %v1314_v63, %v1310_v50  ;;  %v2420_v56 = vpop.eup %2419  ;;  %v1307_v61 = vmul.f32 %v1243_v53, %v795_v38 }
 0x211   : > { %v1311_v42 = vmul.f32 %v1247_v22, %v799_v29  ;;  %v2422_v48 = vpop.eup %2421  ;;  %v1245_v34 = vadd.f32 1.0, %v2420_v56 }
 0x212   : > { %1795 = vmatprep.mubr.bf16.mxu1 %v1346_v13  ;;  %v1249_v57 = vadd.f32 1.0, %v2422_v48 }
 0x213   : > { %v1343_v31 = vpack.c.bf16 %v1311_v42, %v1307_v61  ;;  %v1309_v59 = vmul.f32 %v1245_v34, %v797_v11 }
 0x214   : > { %v1313_v19 = vmul.f32 %v1249_v57, %v801_v24 }
 0x215   : > { %1699 = vmatmul.mubr.bf16.gmra.mrb[60].mxu0 %v1343_v31 }
 0x216   : > { %v1345_v0 = vpack.c.bf16 %v1313_v19, %v1309_v59 }
 0x218   : > { %1796 = vmatmul.mubr.bf16.gmra.mrb[60].mxu1 %v1345_v0 }
 0x275   : > { %v2027_v14 = vpop.f32.mrb[32].mxu0 }
 0x276   : > { %v2028_v39 = vpop.f32.mrb[33].mxu0 }
 0x277   : > { %v2029_v36 = vadd.f32 %v2028_v39, %v2027_v14  ;;  %v2030_v44 = vpop.f32.mrb[34].mxu0 }
 0x278   : > { %v2091_v37 = vpop.f32.mrb[32].mxu1  ;;  %v2031_v21 = vpop.f32.mrb[35].mxu0 }
 0x279   : > { %v2092_v8 = vpop.f32.mrb[33].mxu1  ;;  %v1645_v52 = vadd.f32 %v2029_v36, %v3648_v12  ;;  %v2032_v23 = vadd.f32 %v2031_v21, %v2030_v44 }
 0x27a   : > { %v2093_v33 = vadd.f32 %v2092_v8, %v2091_v37  ;;  %v2094_v55 = vpop.f32.mrb[34].mxu1 }
 0x27b   : > { %v2095_v58 = vpop.f32.mrb[35].mxu1  ;;  %v1648_v30 = vadd.f32 %v2032_v23, %v3648_v12 }
 0x27c   : > { %v1742_v46 = vadd.f32 %v2093_v33, %v1645_v52  ;;  %v2096_v6 = vadd.f32 %v2095_v58, %v2094_v55 }
 0x27e   : > { %1804 = vst [vmem:[%s3654_s12] sm:$0xff] %v1742_v46  ;;  %v1745_v7 = vadd.f32 %v2096_v6, %v1648_v30 }
 0x280   : > { %1805 = vst [vmem:[%s3654_s12 + $0x8] sm:$0xff] %v1745_v7 }
 0x28a   : > { %v2033_v10 = vpop.f32.mrb[36].mxu0 }
 0x28b   : > { %v2034_v41 = vpop.f32.mrb[37].mxu0 }
 0x28c   : > { %v2035_v54 = vadd.f32 %v2034_v41, %v2033_v10  ;;  %v2036_v60 = vpop.f32.mrb[38].mxu0 }
 0x28d   : > { %v2097_v35 = vpop.f32.mrb[36].mxu1  ;;  %v2037_v5 = vpop.f32.mrb[39].mxu0 }
 0x28e   : > { %v1653_v51 = vadd.f32 %v2035_v54, %v3648_v12  ;;  %v2098_v2 = vpop.f32.mrb[37].mxu1  ;;  %v2038_v9 = vadd.f32 %v2037_v5, %v2036_v60 }
 0x28f   : > { %v2099_v3 = vadd.f32 %v2098_v2, %v2097_v35  ;;  %v2100_v49 = vpop.f32.mrb[38].mxu1 }
 0x290   : > { %v1656_v27 = vadd.f32 %v2038_v9, %v3648_v12  ;;  %v2101_v18 = vpop.f32.mrb[39].mxu1 }
 0x291   : > { %v1750_v28 = vadd.f32 %v2099_v3, %v1653_v51  ;;  %v2102_v43 = vadd.f32 %v2101_v18, %v2100_v49 }
 0x293   : > { %1806 = vst [vmem:[%s3654_s12 + $0x10] sm:$0xff] %v1750_v28  ;;  %v1753_v16 = vadd.f32 %v2102_v43, %v1656_v27 }
 0x295   : > { %1807 = vst [vmem:[%s3654_s12 + $0x18] sm:$0xff] %v1753_v16 }
 0x2a0   : > { %v2039_v17 = vpop.f32.mrb[40].mxu0 }
 0x2a1   : > { %v2040_v4 = vpop.f32.mrb[41].mxu0 }
 0x2a2   : > { %v2103_v40 = vpop.f32.mrb[40].mxu1  ;;  %v2041_v15 = vadd.f32 %v2040_v4, %v2039_v17  ;;  %v2042_v26 = vpop.f32.mrb[42].mxu0 }
 0x2a3   : > { %v2104_v25 = vpop.f32.mrb[41].mxu1  ;;  %v2043_v45 = vpop.f32.mrb[43].mxu0 }
 0x2a4   : > { %v1661_v1 = vadd.f32 %v2041_v15, %v3648_v12  ;;  %v2105_v32 = vadd.f32 %v2104_v25, %v2103_v40  ;;  %v2106_v20 = vpop.f32.mrb[42].mxu1  ;;  %v2044_v62 = vadd.f32 %v2043_v45, %v2042_v26 }
 0x2a5   : > { %v2107_v47 = vpop.f32.mrb[43].mxu1 }
 0x2a6   : > { %v1758_v50 = vadd.f32 %v2105_v32, %v1661_v1  ;;  %v1664_v63 = vadd.f32 %v2044_v62, %v3648_v12  ;;  %v2108_v53 = vadd.f32 %v2107_v47, %v2106_v20 }
 0x2a8   : > { %1808 = vst [vmem:[%s3654_s12 + $0x20] sm:$0xff] %v1758_v50  ;;  %v1761_v38 = vadd.f32 %v2108_v53, %v1664_v63 }
 0x2aa   : > { %1809 = vst [vmem:[%s3654_s12 + $0x28] sm:$0xff] %v1761_v38 }
 0x2b5   : > { %v2045_v29 = vpop.f32.mrb[44].mxu0 }
 0x2b6   : > { %v2046_v22 = vpop.f32.mrb[45].mxu0 }
 0x2b7   : > { %v2109_v13 = vpop.f32.mrb[44].mxu1  ;;  %v2047_v56 = vadd.f32 %v2046_v22, %v2045_v29  ;;  %v2048_v61 = vpop.f32.mrb[46].mxu0 }
 0x2b8   : > { %v2110_v42 = vpop.f32.mrb[45].mxu1  ;;  %v2049_v48 = vpop.f32.mrb[47].mxu0 }
 0x2b9   : > { %v1669_v34 = vadd.f32 %v2047_v56, %v3648_v12  ;;  %v2111_v31 = vadd.f32 %v2110_v42, %v2109_v13  ;;  %v2112_v11 = vpop.f32.mrb[46].mxu1  ;;  %v2050_v24 = vadd.f32 %v2049_v48, %v2048_v61 }
 0x2ba   : > { %v2113_v57 = vpop.f32.mrb[47].mxu1 }
 0x2bb   : > { %v1766_v59 = vadd.f32 %v2111_v31, %v1669_v34  ;;  %v1672_v19 = vadd.f32 %v2050_v24, %v3648_v12  ;;  %v2114_v0 = vadd.f32 %v2113_v57, %v2112_v11 }
 0x2bd   : > { %1810 = vst [vmem:[%s3654_s12 + $0x30] sm:$0xff] %v1766_v59  ;;  %v1769_v14 = vadd.f32 %v2114_v0, %v1672_v19 }
 0x2bf   : > { %1811 = vst [vmem:[%s3654_s12 + $0x38] sm:$0xff] %v1769_v14 }
 0x2c2   : > { %v2051_v39 = vpop.f32.mrb[48].mxu0 }
 0x2c3   : > { %v2052_v37 = vpop.f32.mrb[49].mxu0 }
 0x2c4   : > { %v2115_v36 = vpop.f32.mrb[48].mxu1  ;;  %v2053_v44 = vadd.f32 %v2052_v37, %v2051_v39  ;;  %v2054_v8 = vpop.f32.mrb[50].mxu0 }
 0x2c5   : > { %v2116_v21 = vpop.f32.mrb[49].mxu1  ;;  %v2055_v52 = vpop.f32.mrb[51].mxu0 }
 0x2c6   : > { %v1677_v33 = vadd.f32 %v2053_v44, %v3648_v12  ;;  %v2117_v55 = vadd.f32 %v2116_v21, %v2115_v36  ;;  %v2118_v23 = vpop.f32.mrb[50].mxu1  ;;  %v2056_v58 = vadd.f32 %v2055_v52, %v2054_v8 }
 0x2c7   : > { %v2119_v46 = vpop.f32.mrb[51].mxu1 }
 0x2c8   : > { %v1774_v30 = vadd.f32 %v2117_v55, %v1677_v33  ;;  %v1680_v6 = vadd.f32 %v2056_v58, %v3648_v12  ;;  %v2120_v7 = vadd.f32 %v2119_v46, %v2118_v23 }
 0x2ca   : > { %1812 = vst [vmem:[%s3654_s12 + $0x40] sm:$0xff] %v1774_v30  ;;  %v1777_v10 = vadd.f32 %v2120_v7, %v1680_v6 }
 0x2cc   : > { %1813 = vst [vmem:[%s3654_s12 + $0x48] sm:$0xff] %v1777_v10 }
 0x2ce   : > { %v2057_v41 = vpop.f32.mrb[52].mxu0 }
 0x2cf   : > { %v2058_v54 = vpop.f32.mrb[53].mxu0 }
 0x2d0   : > { %v2121_v60 = vpop.f32.mrb[52].mxu1  ;;  %v2059_v35 = vadd.f32 %v2058_v54, %v2057_v41  ;;  %v2060_v5 = vpop.f32.mrb[54].mxu0 }
 0x2d1   : > { %v2122_v51 = vpop.f32.mrb[53].mxu1  ;;  %v2061_v2 = vpop.f32.mrb[55].mxu0 }
 0x2d2   : > { %v1685_v9 = vadd.f32 %v2059_v35, %v3648_v12  ;;  %v2123_v3 = vadd.f32 %v2122_v51, %v2121_v60  ;;  %v2124_v49 = vpop.f32.mrb[54].mxu1  ;;  %v2062_v27 = vadd.f32 %v2061_v2, %v2060_v5 }
 0x2d3   : > { %v2125_v18 = vpop.f32.mrb[55].mxu1 }
 0x2d4   : > { %v1782_v28 = vadd.f32 %v2123_v3, %v1685_v9  ;;  %v1688_v43 = vadd.f32 %v2062_v27, %v3648_v12  ;;  %v2126_v16 = vadd.f32 %v2125_v18, %v2124_v49 }
 0x2d6   : > { %1814 = vst [vmem:[%s3654_s12 + $0x50] sm:$0xff] %v1782_v28  ;;  %v1785_v17 = vadd.f32 %v2126_v16, %v1688_v43 }
 0x2d8   : > { %1815 = vst [vmem:[%s3654_s12 + $0x58] sm:$0xff] %v1785_v17 }
 0x2db   : > { %v2063_v4 = vpop.f32.mrb[56].mxu0 }
 0x2dc   : > { %v2064_v40 = vpop.f32.mrb[57].mxu0 }
 0x2dd   : > { %v2065_v15 = vadd.f32 %v2064_v40, %v2063_v4  ;;  %v2066_v26 = vpop.f32.mrb[58].mxu0 }
 0x2de   : > { %v2067_v25 = vpop.f32.mrb[59].mxu0 }
 0x2df   : > { %v2127_v45 = vpop.f32.mrb[56].mxu1  ;;  %v1693_v1 = vadd.f32 %v2065_v15, %v3648_v12  ;;  %v2068_v32 = vadd.f32 %v2067_v25, %v2066_v26 }
 0x2e0   : > { %v2128_v20 = vpop.f32.mrb[57].mxu1 }
 0x2e1   : > { %v2129_v62 = vadd.f32 %v2128_v20, %v2127_v45  ;;  %v2130_v47 = vpop.f32.mrb[58].mxu1  ;;  %v1696_v50 = vadd.f32 %v2068_v32, %v3648_v12 }
 0x2e2   : > { %v2131_v63 = vpop.f32.mrb[59].mxu1 }
 0x2e3   : > { %v1790_v53 = vadd.f32 %v2129_v62, %v1693_v1  ;;  %v2132_v38 = vadd.f32 %v2131_v63, %v2130_v47 }
 0x2e5   : > { %1816 = vst [vmem:[%s3654_s12 + $0x60] sm:$0xff] %v1790_v53  ;;  %v1793_v29 = vadd.f32 %v2132_v38, %v1696_v50 }
 0x2e7   : > { %1817 = vst [vmem:[%s3654_s12 + $0x68] sm:$0xff] %v1793_v29 }
 0x2e8   : > { %v2069_v22 = vpop.f32.mrb[60].mxu0 }
 0x2e9   : > { %v2070_v13 = vpop.f32.mrb[61].mxu0 }
 0x2ea   : > { %v2071_v56 = vadd.f32 %v2070_v13, %v2069_v22  ;;  %v2072_v61 = vpop.f32.mrb[62].mxu0 }
 0x2eb   : > { %v2073_v42 = vpop.f32.mrb[63].mxu0  ;;  %v2133_v48 = vpop.f32.mrb[60].mxu1 }
 0x2ec   : > { %v1701_v34 = vadd.f32 %v2071_v56, %v3648_v12  ;;  %v2074_v31 = vadd.f32 %v2073_v42, %v2072_v61  ;;  %v2134_v11 = vpop.f32.mrb[61].mxu1 }
 0x2ed   : > { %v2135_v24 = vadd.f32 %v2134_v11, %v2133_v48  ;;  %v2136_v57 = vpop.f32.mrb[62].mxu1 }
 0x2ee   : > { %v1704_v59 = vadd.f32 %v2074_v31, %v3648_v12  ;;  %v2137_v19 = vpop.f32.mrb[63].mxu1 }
 0x2ef   : > { %v1798_v0 = vadd.f32 %v2135_v24, %v1701_v34  ;;  %v2138_v14 = vadd.f32 %v2137_v19, %v2136_v57 }
 0x2f1   : > { %1818 = vst [vmem:[%s3654_s12 + $0x70] sm:$0xff] %v1798_v0  ;;  %v1801_v39 = vadd.f32 %v2138_v14, %v1704_v59 }
 0x2f3   : > { %1819 = vst [vmem:[%s3654_s12 + $0x78] sm:$0xff] %v1801_v39 }
 0x2f4   : > { %2522 = shalt.err (!%p2519_p2)
}
 0x2f5   : > { %s2523_s6 = scalar_lea.hbm %s3689_s11, 2048  ;;  %s2527_s10 = scalar_lea.hbm %s3742_s5, 4096 }
 0x2f6   : > { %p2524_p13 = scmp.ne.s32.totalorder %s3689_s11, %s2523_s6  ;;  %p2528_p4 = scmp.lt.u32.totalorder %s3689_s11, %s3742_s5 }
 0x2f7   : > { %p2529_p7 = scmp.lt.u32.totalorder %s2527_s10, %s2523_s6  ;;  %p2531_p11 = scmp.lt.u32.totalorder %s2523_s6, %s3689_s11 }
 0x2f8   : > { %p2525_p6 = pnand %p2524_p13, %p3962_p0 }
 0x2f9   : > { %p2530_p8 = por %p2529_p7, %p2528_p4 }
 0x2fa   : > { %p2526_p10 = pneg %p2525_p6 }
 0x2fb   : > { %p2532_p1 = por %p2531_p11, %p2530_p8 }
 0x2fd   : > { %p2533_p3 = pnand %p2532_p1, %p2526_p10 }
 0x2ff   : > { %2536 = shalt.err (!%p2533_p3)
}
 0x300   : > { %s2592_s13 = smov 128   ;;  %s2593_s8 = smov 8  }
 0x301   : > { %2149 = dma.vmem_to_hbm [thread:$0]  (%p3962_p0), %s3691_s29, 2048, %s3689_s11, %s1821_s14, %s2592_s13, %s2592_s13, %s2593_s8  }
 0x302 PF: > { %s1849_s9 = sand.u32 1, %s2567_s18   ;;  %p3963_p5 = scmp.ne.s32.totalorder %s3809_s25, 0 }
 0x303   : > { %p3964_p9 = scmp.ge.s32.totalorder %s2579_s21, 2  ;;  %s1850_s15 = scalar_lea.sflag [#allocation4], %s1849_s9 }
 0x305   : > { %p2163_p12 = pnand %p3964_p9, %p3963_p5 }
 0x307   : > { %2562 = dma.done.wait (!%p2163_p12), %s1850_s15, 2048  }
 0x308   : > { %2564 = vsyncadd (!%p2163_p12), %s1850_s15, 4294965248  ;;  %p19_p2 = scmp.ge.s32.totalorder %s2734_s16, 4   ;;  %s3965_s18 = smov %s2571_s19 }
 0x309   : > { %s3966_s19 = smov %s2575_s20  ;;  %s3967_s20 = smov %s2743_s27 }
 0x30a   : > { %s3968_s21 = smov %s2734_s16  ;;  %21 = sbr.rel (!%p19_p2) target bundleno = 6 (0x6), region = 93 }
 0x311   :  { %1855 = vsyncpa [#allocation3], 1 }
 0x312   :  { %1857 = vsyncpa [#allocation3 + $0x1], 1 }
 0x313   :  { %1858 = vsyncpa [#allocation6], 1 }
 0x314   :  { %1859 = vsyncpa [#allocation4], 1 }
 0x315   :  { %1861 = vsyncpa [#allocation4 + $0x1], 1 }

</bundles_post_ra>
